<compile_context>
chip_gen: v7x
topology: tpu7x:2x2x1
jax: 0.10.0
libtpu: 0.0.40
codegen_flags: <defaults>
</compile_context>

<pallas_src>
import functools

import jax
import jax.numpy as jnp
from jax import lax
from jax.experimental import pallas as pl
from jax.experimental.pallas import tpu as pltpu
import numpy as np


# Keep scoped VMEM below v7x's 64 MiB physical cap (also fine on v5e/v6e).
_VMEM_LIMIT_BYTES = 48 * 1024 * 1024


# ---------------------------------------------------------------------------
# 1) Bi-LSTM recurrence kernel: grid = (time-tiles,), both directions
#    interleaved in one body (two independent dependence chains -> the VLIW
#    scheduler hides one chain's MXU/EUP latency under the other on a single
#    TensorCore).  One fused h @ Whh[H, 4H] matmul per direction per step.
# ---------------------------------------------------------------------------
def _lstm_kernel(gxf_ref, gxb_ref, whh_ref, outf_ref, outb_ref,
                 hf, cf, hb, cb, *, tile_t, hidden):
    # gxf_ref: [tile_t, B, 4H]  forward  x@Wih^T + b tile (f32), tiles in order
    # gxb_ref: [tile_t, B, 4H]  backward tile, tiles supplied in REVERSE order
    # whh_ref: [2, H, 4H]       gate-fused, pre-transposed recurrent weights
    # outf/outb: [tile_t, B, H] hidden states (compute dtype)
    tt = pl.program_id(0)

    @pl.when(tt == 0)
    def _():
        hf[...] = jnp.zeros_like(hf)
        cf[...] = jnp.zeros_like(cf)
        hb[...] = jnp.zeros_like(hb)
        cb[...] = jnp.zeros_like(cb)

    cdt = whh_ref.dtype
    H = hidden
    whh_f = whh_ref[0]                      # [H, 4H] hoisted out of the loop
    whh_b = whh_ref[1]

    def cell(gates_x, h_prev, c_prev, whh):
        # single fused-gate recurrent matmul: [B, H] @ [H, 4H] -> [B, 4H]
        g = gates_x + jnp.dot(h_prev.astype(cdt), whh,
                              preferred_element_type=jnp.float32)
        i_g = jax.nn.sigmoid(g[:, 0:H])
        f_g = jax.nn.sigmoid(g[:, H:2 * H])
        c_t = jnp.tanh(g[:, 2 * H:3 * H])
        o_g = jax.nn.sigmoid(g[:, 3 * H:4 * H])
        c_new = f_g * c_prev + i_g * c_t    # cell state kept in f32
        h_new = o_g * jnp.tanh(c_new)
        return h_new, c_new

    # Static (Python int) time indices; the two chains are independent.
    for i in range(tile_t):
        tb = tile_t - 1 - i                 # backward walks its tile reversed
        h_f, c_f = cell(gxf_ref[i], hf[...], cf[...], whh_f)
        h_b, c_b = cell(gxb_ref[tb], hb[...], cb[...], whh_b)
        hf[...] = h_f
        cf[...] = c_f
        hb[...] = h_b
        cb[...] = c_b
        outf_ref[i] = h_f.astype(outf_ref.dtype)
        outb_ref[tb] = h_b.astype(outb_ref.dtype)


def _pick_time_tile(T: int) -> int:
    # Largest power-of-two tile that divides T and leaves >= 2 tiles so the
    # time axis is pipelined (bounds VMEM for long sequences).
    for cand in (64, 32, 16, 8, 4, 2, 1):
        if cand <= T and T % cand == 0 and T // cand >= 2:
            return cand
    return T


def _input_projection(x_chunks, wih_chunks, bias, compute_dtype):
    # x_chunks: tuple of [T, B, D_i] activations; wih_chunks: matching
    # [D_i, 4H] gate-fused weight chunks.  One big GEMM over all timesteps,
    # f32 accumulation, bias folded in.
    gx = None
    for xc, wc in zip(x_chunks, wih_chunks):
        g = jnp.einsum("tbd,dg->tbg", xc.astype(compute_dtype),
                       wc.astype(compute_dtype),
                       preferred_element_type=jnp.float32)
        gx = g if gx is None else gx + g
    return gx + bias                        # bias: [4H], stays f32


def bilstm_layer(x_chunks, layer, compute_dtype):
    # x_chunks: tuple of time-major activations ([T,B,Din],) for layer 0 or
    # ([T,B,H], [T,B,H]) for deeper layers.  Returns (out_f, out_b).
    T, B, _ = x_chunks[0].shape
    whh = layer["whh"]                      # [2, H, 4H]
    H = whh.shape[1]

    gx_f = _input_projection(x_chunks, layer["wih_f_chunks"], layer["b_f"],
                             compute_dtype)
    gx_b = _input_projection(x_chunks, layer["wih_b_chunks"], layer["b_b"],
                             compute_dtype)

    tile_t = _pick_time_tile(T)
    n_tiles = T // tile_t
    out_dtype = compute_dtype               # bf16 hidden output on bf16 path

    out_f, out_b = pl.pallas_call(
        functools.partial(_lstm_kernel, tile_t=tile_t, hidden=H),
        grid=(n_tiles,),
        in_specs=[
            pl.BlockSpec((tile_t, B, 4 * H), lambda tt: (tt, 0, 0)),
            pl.BlockSpec((tile_t, B, 4 * H),
                         lambda tt: (n_tiles - 1 - tt, 0, 0)),
            pl.BlockSpec((2, H, 4 * H), lambda tt: (0, 0, 0)),
        ],
        out_specs=[
            pl.BlockSpec((tile_t, B, H), lambda tt: (tt, 0, 0)),
            pl.BlockSpec((tile_t, B, H),
                         lambda tt: (n_tiles - 1 - tt, 0, 0)),
        ],
        out_shape=[jax.ShapeDtypeStruct((T, B, H), out_dtype),
                   jax.ShapeDtypeStruct((T, B, H), out_dtype)],
        scratch_shapes=[pltpu.VMEM((B, H), jnp.float32),   # h fwd
                        pltpu.VMEM((B, H), jnp.float32),   # c fwd
                        pltpu.VMEM((B, H), jnp.float32),   # h bwd
                        pltpu.VMEM((B, H), jnp.float32)],  # c bwd
        compiler_params=pltpu.CompilerParams(
            dimension_semantics=("arbitrary",),
            vmem_limit_bytes=_VMEM_LIMIT_BYTES),
    )(gx_f, gx_b, whh.astype(compute_dtype))
    return out_f, out_b


def bilstm(word_features_btd, lstm_layers, compute_dtype):
    # To time-major ONCE; stay time-major and split-by-direction through the
    # whole stack (no per-layer transpose / concat copies).
    x_chunks = (jnp.transpose(word_features_btd, (1, 0, 2)),)   # [T, B, Din]
    for layer in lstm_layers:
        x_chunks = bilstm_layer(x_chunks, layer, compute_dtype)
    return x_chunks                                             # (xf, xb)


# ---------------------------------------------------------------------------
# 2) Fused FFW(start) + FFW(end) + Biaffine head, gridded over batch.
#    start/end never leave VMEM; first FFW layers fused into one GEMM;
#    per-class bilinear batched into one [Dh, C*Dh] GEMM; end^T hoisted.
# ---------------------------------------------------------------------------
def _head_kernel(xf_ref, xb_ref,
                 w1t_ref, w1b_ref, b1_ref,
                 w2s_ref, b2s_ref, w2e_ref, b2e_ref,
                 wm_ref, wcol_ref, wrow_ref, wcorner_ref,
                 o_ref, *, num_labels, d_ffw, d_h):
    cdt = w1t_ref.dtype
    xf = xf_ref[...].astype(cdt)                               # [T, H]
    xb = xb_ref[...].astype(cdt)                               # [T, H]

    # Fused FFW first layer for start & end: [T, 2*Dffw]
    h_cat = jnp.maximum(
        jnp.dot(xf, w1t_ref[...], preferred_element_type=jnp.float32)
        + jnp.dot(xb, w1b_ref[...], preferred_element_type=jnp.float32)
        + b1_ref[...], 0.0)
    hs = h_cat[:, :d_ffw].astype(cdt)
    he = h_cat[:, d_ffw:].astype(cdt)
    start = (jnp.dot(hs, w2s_ref[...], preferred_element_type=jnp.float32)
             + b2s_ref[...])                                   # [T, Dh]
    end = (jnp.dot(he, w2e_ref[...], preferred_element_type=jnp.float32)
           + b2e_ref[...])                                     # [T, Dh]

    start_c = start.astype(cdt)
    end_t = end.astype(cdt).T                 # [Dh, T], transposed ONCE

    # Batched bilinear: u_all[:, c*Dh:(c+1)*Dh] = start @ Wm_c + wcol_c
    u_all = (jnp.dot(start_c, wm_ref[...], preferred_element_type=jnp.float32)
             + wcol_ref[...])                                  # [T, C*Dh]
    # Rank-1 row term for all classes in one GEMM: [T, C]
    row_all = (jnp.dot(start_c, wrow_ref[...],
                       preferred_element_type=jnp.float32)
               + wcorner_ref[...])

    for c in range(num_labels):
        u_c = u_all[:, c * d_h:(c + 1) * d_h].astype(cdt)      # [T, Dh]
        s = jnp.dot(u_c, end_t, preferred_element_type=jnp.float32)  # [T, T]
        o_ref[c] = s + row_all[:, c:c + 1]


def ffw_biaffine(xf_tbh, xb_tbh, p, compute_dtype):
    T, B, H = xf_tbh.shape
    Dffw, Dh = p["w2s"].shape
    C = p["wrow"].shape[1]
    cdt = compute_dtype

    # One-time layout fixup for the batch-gridded head (blocks with full
    # trailing dims); the whole LSTM stack stayed time-major.
    xf = jnp.transpose(xf_tbh, (1, 0, 2))                      # [B, T, H]
    xb = jnp.transpose(xb_tbh, (1, 0, 2))

    def full(shape):
        return pl.BlockSpec(shape, lambda b: (0,) * len(shape))

    out = pl.pallas_call(
        functools.partial(_head_kernel, num_labels=C, d_ffw=Dffw, d_h=Dh),
        grid=(B,),
        in_specs=[
            pl.BlockSpec((None, T, H), lambda b: (b, 0, 0)),
            pl.BlockSpec((None, T, H), lambda b: (b, 0, 0)),
            full((H, 2 * Dffw)), full((H, 2 * Dffw)), full((1, 2 * Dffw)),
            full((Dffw, Dh)), full((1, Dh)), full((Dffw, Dh)), full((1, Dh)),
            full((Dh, C * Dh)), full((1, C * Dh)),
            full((Dh, C)), full((1, C)),
        ],
        out_specs=pl.BlockSpec((None, C, T, T), lambda b: (b, 0, 0, 0)),
        out_shape=jax.ShapeDtypeStruct((B, C, T, T), jnp.float32),
        compiler_params=pltpu.CompilerParams(
            dimension_semantics=("parallel",),
            vmem_limit_bytes=_VMEM_LIMIT_BYTES),
    )(xf, xb,
      p["w1_top"].astype(cdt), p["w1_bot"].astype(cdt), p["b1"],
      p["w2s"].astype(cdt), p["b2s"], p["w2e"].astype(cdt), p["b2e"],
      p["wm"].astype(cdt), p["wcol"],
      p["wrow"].astype(cdt), p["wcorner"])
    # lane-dense [B, C, T, T] -> module layout [B, T, T, C]
    # TODO(synk): keep class-major downstream if the consumer allows, to
    #             avoid this full-output HBM permute.
    return jnp.transpose(out, (0, 2, 3, 1))


# ---------------------------------------------------------------------------
# Full forward: word_features -> BiLSTM stack -> fused FFW/biaffine head
# ---------------------------------------------------------------------------
@functools.partial(jax.jit, static_argnames=("compute_dtype",))
def model_forward(prepped, word_features, compute_dtype=jnp.float32):
    xf, xb = bilstm(word_features, prepped["lstm"], compute_dtype)
    return ffw_biaffine(xf, xb, prepped, compute_dtype)


# ---------------------------------------------------------------------------
# Parameter init (PyTorch layout) + one-time re-layout for the kernels
# ---------------------------------------------------------------------------
def init_params(key, *, d_in, hidden_dim, d_ffw, num_labels, num_layers):
    H = hidden_dim // 2
    keys = iter(jax.random.split(key, 64))

    def rnd(shape, scale=0.1):
        return jax.random.normal(next(keys), shape, jnp.float32) * scale

    lstm = []
    in_size = d_in
    for _ in range(num_layers):
        lstm.append({
            "wih_f": rnd((4 * H, in_size)), "whh_f": rnd((4 * H, H)),
            "b_f": rnd((4 * H,)),
            "wih_b": rnd((4 * H, in_size)), "whh_b": rnd((4 * H, H)),
            "b_b": rnd((4 * H,)),
        })
        in_size = hidden_dim

    return {
        "lstm": lstm,
        "ffw_start": (rnd((d_ffw, hidden_dim)), rnd((d_ffw,)),
                      rnd((hidden_dim, d_ffw)), rnd((hidden_dim,))),
        "ffw_end": (rnd((d_ffw, hidden_dim)), rnd((d_ffw,)),
                    rnd((hidden_dim, d_ffw)), rnd((hidden_dim,))),
        "biaffine_w": rnd((hidden_dim + 1, num_labels, hidden_dim + 1)),
    }


def prepare_params(params):
    """One-time pre-transpose / gate-fuse / bias-split / class-batch re-layout."""
    lstm = []
    for li, layer in enumerate(params["lstm"]):
        H = layer["whh_f"].shape[1]
        wih_f, whh_f = layer["wih_f"].T, layer["whh_f"].T   # [Din,4H],[H,4H]
        wih_b, whh_b = layer["wih_b"].T, layer["whh_b"].T
        entry = {
            "whh": jnp.stack([whh_f, whh_b]),               # [2, H, 4H]
            "b_f": layer["b_f"], "b_b": layer["b_b"],        # [4H]
        }
        if li == 0:
            entry["wih_f_chunks"] = (wih_f,)
            entry["wih_b_chunks"] = (wih_b,)
        else:
            # deeper layers consume (fwd_hidden, bwd_hidden) chunks directly
            entry["wih_f_chunks"] = (wih_f[:H], wih_f[H:])
            entry["wih_b_chunks"] = (wih_b[:H], wih_b[H:])
        lstm.append(entry)

    w1s, b1s, w2s, b2s = params["ffw_start"]
    w1e, b1e, w2e, b2e = params["ffw_end"]
    w1s_t, w1e_t = w1s.T, w1e.T                              # [Dh, Dffw]
    Dh = w1s_t.shape[0]
    H = Dh // 2
    w1_cat = jnp.concatenate([w1s_t, w1e_t], axis=1)         # [Dh, 2*Dffw]
    b1_cat = jnp.concatenate([b1s, b1e])[None, :]            # [1, 2*Dffw]

    W = params["biaffine_w"]                                 # [Dh+1, C, Dh+1]
    D = W.shape[0] - 1
    C = W.shape[1]
    return {
        "lstm": lstm,
        "w1_top": w1_cat[:H], "w1_bot": w1_cat[H:], "b1": b1_cat,
        "w2s": w2s.T, "b2s": b2s[None, :],
        "w2e": w2e.T, "b2e": b2e[None, :],
        "wm": W[:D, :, :D].reshape(D, C * D),                # [Dh, C*Dh]
        "wcol": W[D, :, :D].reshape(1, C * D),               # [1, C*Dh]
        "wrow": W[:D, :, D],                                 # [Dh, C]
        "wcorner": W[D, :, D][None, :],                      # [1, C]
    }


# ---------------------------------------------------------------------------
# Pure-JAX reference (same math, PyTorch-layout params)
# ---------------------------------------------------------------------------
def _lstm_dir_ref(x, wih, whh, b, reverse):
    B, T, _ = x.shape
    H = whh.shape[1]
    h = jnp.zeros((B, H), jnp.float32)
    c = jnp.zeros((B, H), jnp.float32)
    out = jnp.zeros((B, T, H), jnp.float32)
    ts = range(T - 1, -1, -1) if reverse else range(T)
    for t in ts:
        g = x[:, t] @ wih.T + h @ whh.T + b
        i_g = jax.nn.sigmoid(g[:, 0:H])
        f_g = jax.nn.sigmoid(g[:, H:2 * H])
        g_g = jnp.tanh(g[:, 2 * H:3 * H])
        o_g = jax.nn.sigmoid(g[:, 3 * H:4 * H])
        c = f_g * c + i_g * g_g
        h = o_g * jnp.tanh(c)
        out = out.at[:, t].set(h)
    return out


def model_ref(params, word_features):
    x = word_features
    for layer in params["lstm"]:
        f = _lstm_dir_ref(x, layer["wih_f"], layer["whh_f"], layer["b_f"], False)
        b = _lstm_dir_ref(x, layer["wih_b"], layer["whh_b"], layer["b_b"], True)
        x = jnp.concatenate([f, b], axis=-1)

    def ffw(x, w1, b1, w2, b2):
        return jnp.maximum(x @ w1.T + b1, 0.0) @ w2.T + b2

    start = ffw(x, *params["ffw_start"])
    end = ffw(x, *params["ffw_end"])
    B, T, _ = start.shape
    ones = jnp.ones((B, T, 1), jnp.float32)
    s1 = jnp.concatenate([start, ones], axis=2)
    s2 = jnp.concatenate([end, ones], axis=2)
    return jnp.einsum("bid,dcq,bjq->bijc", s1, params["biaffine_w"], s2)


# ---------------------------------------------------------------------------
if __name__ == "__main__":
    B, T = 2, 8
    D_IN = 32            # lstm_input_size (bert_embed_only, hidden_size=32)
    HIDDEN_DIM = 32      # args.hidden_dim  (per-direction LSTM hidden = 16)
    D_FFW = 64           # args.hidden_dim_ffw
    NUM_LABELS = 5       # args.num_labels
    NUM_LAYERS = 2       # args.rnn_num_layers

    key = jax.random.PRNGKey(0)
    k_par, k_x = jax.random.split(key)
    params = init_params(k_par, d_in=D_IN, hidden_dim=HIDDEN_DIM,
                         d_ffw=D_FFW, num_labels=NUM_LABELS,
                         num_layers=NUM_LAYERS)
    prepped = prepare_params(params)
    word_features = jax.random.normal(k_x, (B, T, D_IN), jnp.float32)

    ref = model_ref(params, word_features)

    # f32 compute path: strict check against the pure-JAX reference.
    score = jax.block_until_ready(model_forward(prepped, word_features))
    assert score.shape == (B, T, T, NUM_LABELS)
    np.testing.assert_allclose(np.asarray(score), np.asarray(ref),
                               rtol=2e-2, atol=2e-2)

    # bf16 MXU-input / f32-accumulate path (bf16 inter-layer hiddens), looser.
    score_bf16 = jax.block_until_ready(
        model_forward(prepped, word_features, compute_dtype=jnp.bfloat16))
    np.testing.assert_allclose(np.asarray(score_bf16), np.asarray(ref),
                               rtol=2e-1, atol=2e-1)

    print("KERNEL_OK")
</pallas_src>

<mosaic_0001>
module attributes {stable_mosaic.version = 11 : i64} {
  func.func @_lstm_kernel(%arg0: i32, %arg1: memref<4x2x64xf32, #tpu.memory_space<vmem>>, %arg2: memref<4x2x64xf32, #tpu.memory_space<vmem>>, %arg3: memref<2x16x64xf32, #tpu.memory_space<vmem>>, %arg4: memref<4x2x16xf32, #tpu.memory_space<vmem>>, %arg5: memref<4x2x16xf32, #tpu.memory_space<vmem>>, %arg6: memref<2x16xf32, #tpu.memory_space<vmem>>, %arg7: memref<2x16xf32, #tpu.memory_space<vmem>>, %arg8: memref<2x16xf32, #tpu.memory_space<vmem>>, %arg9: memref<2x16xf32, #tpu.memory_space<vmem>>) attributes {dimension_semantics = [#tpu.dimension_semantics<arbitrary>], iteration_bounds = array<i64: 2>, scalar_prefetch = 0 : i64, scratch_operands = 4 : i64, tpu.core_type = #tpu.core_type<tc>, window_params = [{transform_indices = @transform_0, window_bounds = array<i64: 4, 2, 64>}, {transform_indices = @transform_1, window_bounds = array<i64: 4, 2, 64>}, {pipeline_mode = #tpu.pipeline_mode<synchronous>, transform_indices = @transform_2, window_bounds = array<i64: 2, 16, 64>}, {transform_indices = @transform_3, window_bounds = array<i64: 4, 2, 16>}, {transform_indices = @transform_4, window_bounds = array<i64: 4, 2, 16>}]} {
    %c0_i32 = arith.constant 0 : i32
    %0 = arith.cmpi eq, %arg0, %c0_i32 : i32
    %1 = arith.extui %0 : i1 to i32
    %c0_i32_0 = arith.constant 0 : i32
    %2 = arith.cmpi ne, %1, %c0_i32_0 : i32
    scf.if %2 {
      %cst_146 = arith.constant 0.000000e+00 : f32
      %295 = vector.broadcast %cst_146 : f32 to vector<2x16xf32>
      %c0_147 = arith.constant 0 : index
      %c0_148 = arith.constant 0 : index
      %296 = vector.load %arg6[%c0_147, %c0_148] : memref<2x16xf32, #tpu.memory_space<vmem>>, vector<2x16xf32>
      tpu.vector_store %arg6[%c0_147, %c0_148], %295 {strides = array<i32>} : memref<2x16xf32, #tpu.memory_space<vmem>>, vector<2x16xf32>,
      %cst_149 = arith.constant 0.000000e+00 : f32
      %297 = vector.broadcast %cst_149 : f32 to vector<2x16xf32>
      %c0_150 = arith.constant 0 : index
      %c0_151 = arith.constant 0 : index
      %298 = vector.load %arg7[%c0_150, %c0_151] : memref<2x16xf32, #tpu.memory_space<vmem>>, vector<2x16xf32>
      tpu.vector_store %arg7[%c0_150, %c0_151], %297 {strides = array<i32>} : memref<2x16xf32, #tpu.memory_space<vmem>>, vector<2x16xf32>,
      %cst_152 = arith.constant 0.000000e+00 : f32
      %299 = vector.broadcast %cst_152 : f32 to vector<2x16xf32>
      %c0_153 = arith.constant 0 : index
      %c0_154 = arith.constant 0 : index
      %300 = vector.load %arg8[%c0_153, %c0_154] : memref<2x16xf32, #tpu.memory_space<vmem>>, vector<2x16xf32>
      tpu.vector_store %arg8[%c0_153, %c0_154], %299 {strides = array<i32>} : memref<2x16xf32, #tpu.memory_space<vmem>>, vector<2x16xf32>,
      %cst_155 = arith.constant 0.000000e+00 : f32
      %301 = vector.broadcast %cst_155 : f32 to vector<2x16xf32>
      %c0_156 = arith.constant 0 : index
      %c0_157 = arith.constant 0 : index
      %302 = vector.load %arg9[%c0_156, %c0_157] : memref<2x16xf32, #tpu.memory_space<vmem>>, vector<2x16xf32>
      tpu.vector_store %arg9[%c0_156, %c0_157], %301 {strides = array<i32>} : memref<2x16xf32, #tpu.memory_space<vmem>>, vector<2x16xf32>,
    } else {
    }
    %c0 = arith.constant 0 : index
    %c0_1 = arith.constant 0 : index
    %c0_2 = arith.constant 0 : index
    %3 = vector.load %arg3[%c0, %c0_1, %c0_2] : memref<2x16x64xf32, #tpu.memory_space<vmem>>, vector<1x16x64xf32>
    %4 = vector.shape_cast %3 : vector<1x16x64xf32> to vector<16x64xf32>
    %c1 = arith.constant 1 : index
    %c0_3 = arith.constant 0 : index
    %c0_4 = arith.constant 0 : index
    %5 = vector.load %arg3[%c1, %c0_3, %c0_4] : memref<2x16x64xf32, #tpu.memory_space<vmem>>, vector<1x16x64xf32>
    %6 = vector.shape_cast %5 : vector<1x16x64xf32> to vector<16x64xf32>
    %c0_5 = arith.constant 0 : index
    %c0_6 = arith.constant 0 : index
    %c0_7 = arith.constant 0 : index
    %7 = vector.load %arg1[%c0_5, %c0_6, %c0_7] : memref<4x2x64xf32, #tpu.memory_space<vmem>>, vector<1x2x64xf32>
    %8 = vector.shape_cast %7 : vector<1x2x64xf32> to vector<2x64xf32>
    %c0_8 = arith.constant 0 : index
    %c0_9 = arith.constant 0 : index
    %9 = vector.load %arg6[%c0_8, %c0_9] : memref<2x16xf32, #tpu.memory_space<vmem>>, vector<2x16xf32>
    %c0_10 = arith.constant 0 : index
    %c0_11 = arith.constant 0 : index
    %10 = vector.load %arg7[%c0_10, %c0_11] : memref<2x16xf32, #tpu.memory_space<vmem>>, vector<2x16xf32>
    %cst = arith.constant dense<0.000000e+00> : vector<2x64xf32>
    %11 = tpu.matmul %9, %4, %cst {dimension_numbers = #tpu.dot_dimension_numbers<[1], [0], [0], [1], [0, 0, 1, 1], [], []>} : vector<2x16xf32>, vector<16x64xf32>, vector<2x64xf32> -> vector<2x64xf32>
    %12 = arith.addf %8, %11 : vector<2x64xf32>
    %13 = vector.extract_strided_slice %12 {offsets = [0, 0], sizes = [2, 16], strides = [1, 1]} : vector<2x64xf32> to vector<2x16xf32>
    %14 = arith.negf %13 : vector<2x16xf32>
    %15 = math.exp %14 : vector<2x16xf32>
    %cst_12 = arith.constant 1.000000e+00 : f32
    %16 = vector.broadcast %cst_12 : f32 to vector<2x16xf32>
    %17 = arith.addf %16, %15 : vector<2x16xf32>
    %18 = arith.divf %16, %17 : vector<2x16xf32>
    %19 = vector.extract_strided_slice %12 {offsets = [0, 16], sizes = [2, 16], strides = [1, 1]} : vector<2x64xf32> to vector<2x16xf32>
    %20 = arith.negf %19 : vector<2x16xf32>
    %21 = math.exp %20 : vector<2x16xf32>
    %cst_13 = arith.constant 1.000000e+00 : f32
    %22 = vector.broadcast %cst_13 : f32 to vector<2x16xf32>
    %23 = arith.addf %22, %21 : vector<2x16xf32>
    %24 = arith.divf %22, %23 : vector<2x16xf32>
    %25 = vector.extract_strided_slice %12 {offsets = [0, 32], sizes = [2, 16], strides = [1, 1]} : vector<2x64xf32> to vector<2x16xf32>
    %26 = math.tanh %25 : vector<2x16xf32>
    %27 = vector.extract_strided_slice %12 {offsets = [0, 48], sizes = [2, 16], strides = [1, 1]} : vector<2x64xf32> to vector<2x16xf32>
    %28 = arith.negf %27 : vector<2x16xf32>
    %29 = math.exp %28 : vector<2x16xf32>
    %cst_14 = arith.constant 1.000000e+00 : f32
    %30 = vector.broadcast %cst_14 : f32 to vector<2x16xf32>
    %31 = arith.addf %30, %29 : vector<2x16xf32>
    %32 = arith.divf %30, %31 : vector<2x16xf32>
    %33 = arith.mulf %24, %10 : vector<2x16xf32>
    %34 = arith.mulf %18, %26 : vector<2x16xf32>
    %35 = arith.addf %33, %34 : vector<2x16xf32>
    %36 = math.tanh %35 : vector<2x16xf32>
    %37 = arith.mulf %32, %36 : vector<2x16xf32>
    %c3 = arith.constant 3 : index
    %c0_15 = arith.constant 0 : index
    %c0_16 = arith.constant 0 : index
    %38 = vector.load %arg2[%c3, %c0_15, %c0_16] : memref<4x2x64xf32, #tpu.memory_space<vmem>>, vector<1x2x64xf32>
    %39 = vector.shape_cast %38 : vector<1x2x64xf32> to vector<2x64xf32>
    %c0_17 = arith.constant 0 : index
    %c0_18 = arith.constant 0 : index
    %40 = vector.load %arg8[%c0_17, %c0_18] : memref<2x16xf32, #tpu.memory_space<vmem>>, vector<2x16xf32>
    %c0_19 = arith.constant 0 : index
    %c0_20 = arith.constant 0 : index
    %41 = vector.load %arg9[%c0_19, %c0_20] : memref<2x16xf32, #tpu.memory_space<vmem>>, vector<2x16xf32>
    %cst_21 = arith.constant dense<0.000000e+00> : vector<2x64xf32>
    %42 = tpu.matmul %40, %6, %cst_21 {dimension_numbers = #tpu.dot_dimension_numbers<[1], [0], [0], [1], [0, 0, 1, 1], [], []>} : vector<2x16xf32>, vector<16x64xf32>, vector<2x64xf32> -> vector<2x64xf32>
    %43 = arith.addf %39, %42 : vector<2x64xf32>
    %44 = vector.extract_strided_slice %43 {offsets = [0, 0], sizes = [2, 16], strides = [1, 1]} : vector<2x64xf32> to vector<2x16xf32>
    %45 = arith.negf %44 : vector<2x16xf32>
    %46 = math.exp %45 : vector<2x16xf32>
    %cst_22 = arith.constant 1.000000e+00 : f32
    %47 = vector.broadcast %cst_22 : f32 to vector<2x16xf32>
    %48 = arith.addf %47, %46 : vector<2x16xf32>
    %49 = arith.divf %47, %48 : vector<2x16xf32>
    %50 = vector.extract_strided_slice %43 {offsets = [0, 16], sizes = [2, 16], strides = [1, 1]} : vector<2x64xf32> to vector<2x16xf32>
    %51 = arith.negf %50 : vector<2x16xf32>
    %52 = math.exp %51 : vector<2x16xf32>
    %cst_23 = arith.constant 1.000000e+00 : f32
    %53 = vector.broadcast %cst_23 : f32 to vector<2x16xf32>
    %54 = arith.addf %53, %52 : vector<2x16xf32>
    %55 = arith.divf %53, %54 : vector<2x16xf32>
    %56 = vector.extract_strided_slice %43 {offsets = [0, 32], sizes = [2, 16], strides = [1, 1]} : vector<2x64xf32> to vector<2x16xf32>
    %57 = math.tanh %56 : vector<2x16xf32>
    %58 = vector.extract_strided_slice %43 {offsets = [0, 48], sizes = [2, 16], strides = [1, 1]} : vector<2x64xf32> to vector<2x16xf32>
    %59 = arith.negf %58 : vector<2x16xf32>
    %60 = math.exp %59 : vector<2x16xf32>
    %cst_24 = arith.constant 1.000000e+00 : f32
    %61 = vector.broadcast %cst_24 : f32 to vector<2x16xf32>
    %62 = arith.addf %61, %60 : vector<2x16xf32>
    %63 = arith.divf %61, %62 : vector<2x16xf32>
    %64 = arith.mulf %55, %41 : vector<2x16xf32>
    %65 = arith.mulf %49, %57 : vector<2x16xf32>
    %66 = arith.addf %64, %65 : vector<2x16xf32>
    %67 = math.tanh %66 : vector<2x16xf32>
    %68 = arith.mulf %63, %67 : vector<2x16xf32>
    %c0_25 = arith.constant 0 : index
    %c0_26 = arith.constant 0 : index
    %69 = vector.load %arg6[%c0_25, %c0_26] : memref<2x16xf32, #tpu.memory_space<vmem>>, vector<2x16xf32>
    tpu.vector_store %arg6[%c0_25, %c0_26], %37 {strides = array<i32>} : memref<2x16xf32, #tpu.memory_space<vmem>>, vector<2x16xf32>,
    %c0_27 = arith.constant 0 : index
    %c0_28 = arith.constant 0 : index
    %70 = vector.load %arg7[%c0_27, %c0_28] : memref<2x16xf32, #tpu.memory_space<vmem>>, vector<2x16xf32>
    tpu.vector_store %arg7[%c0_27, %c0_28], %35 {strides = array<i32>} : memref<2x16xf32, #tpu.memory_space<vmem>>, vector<2x16xf32>,
    %c0_29 = arith.constant 0 : index
    %c0_30 = arith.constant 0 : index
    %71 = vector.load %arg8[%c0_29, %c0_30] : memref<2x16xf32, #tpu.memory_space<vmem>>, vector<2x16xf32>
    tpu.vector_store %arg8[%c0_29, %c0_30], %68 {strides = array<i32>} : memref<2x16xf32, #tpu.memory_space<vmem>>, vector<2x16xf32>,
    %c0_31 = arith.constant 0 : index
    %c0_32 = arith.constant 0 : index
    %72 = vector.load %arg9[%c0_31, %c0_32] : memref<2x16xf32, #tpu.memory_space<vmem>>, vector<2x16xf32>
    tpu.vector_store %arg9[%c0_31, %c0_32], %66 {strides = array<i32>} : memref<2x16xf32, #tpu.memory_space<vmem>>, vector<2x16xf32>,
    %c0_33 = arith.constant 0 : index
    %c0_34 = arith.constant 0 : index
    %c0_35 = arith.constant 0 : index
    %73 = vector.load %arg4[%c0_33, %c0_34, %c0_35] : memref<4x2x16xf32, #tpu.memory_space<vmem>>, vector<1x2x16xf32>
    %74 = vector.shape_cast %73 : vector<1x2x16xf32> to vector<2x16xf32>
    %75 = vector.shape_cast %37 : vector<2x16xf32> to vector<1x2x16xf32>
    tpu.vector_store %arg4[%c0_33, %c0_34, %c0_35], %75 {strides = array<i32>} : memref<4x2x16xf32, #tpu.memory_space<vmem>>, vector<1x2x16xf32>,
    %c3_36 = arith.constant 3 : index
    %c0_37 = arith.constant 0 : index
    %c0_38 = arith.constant 0 : index
    %76 = vector.load %arg5[%c3_36, %c0_37, %c0_38] : memref<4x2x16xf32, #tpu.memory_space<vmem>>, vector<1x2x16xf32>
    %77 = vector.shape_cast %76 : vector<1x2x16xf32> to vector<2x16xf32>
    %78 = vector.shape_cast %68 : vector<2x16xf32> to vector<1x2x16xf32>
    tpu.vector_store %arg5[%c3_36, %c0_37, %c0_38], %78 {strides = array<i32>} : memref<4x2x16xf32, #tpu.memory_space<vmem>>, vector<1x2x16xf32>,
    %c1_39 = arith.constant 1 : index
    %c0_40 = arith.constant 0 : index
    %c0_41 = arith.constant 0 : index
    %79 = vector.load %arg1[%c1_39, %c0_40, %c0_41] : memref<4x2x64xf32, #tpu.memory_space<vmem>>, vector<1x2x64xf32>
    %80 = vector.shape_cast %79 : vector<1x2x64xf32> to vector<2x64xf32>
    %c0_42 = arith.constant 0 : index
    %c0_43 = arith.constant 0 : index
    %81 = vector.load %arg6[%c0_42, %c0_43] : memref<2x16xf32, #tpu.memory_space<vmem>>, vector<2x16xf32>
    %c0_44 = arith.constant 0 : index
    %c0_45 = arith.constant 0 : index
    %82 = vector.load %arg7[%c0_44, %c0_45] : memref<2x16xf32, #tpu.memory_space<vmem>>, vector<2x16xf32>
    %cst_46 = arith.constant dense<0.000000e+00> : vector<2x64xf32>
    %83 = tpu.matmul %81, %4, %cst_46 {dimension_numbers = #tpu.dot_dimension_numbers<[1], [0], [0], [1], [0, 0, 1, 1], [], []>} : vector<2x16xf32>, vector<16x64xf32>, vector<2x64xf32> -> vector<2x64xf32>
    %84 = arith.addf %80, %83 : vector<2x64xf32>
    %85 = vector.extract_strided_slice %84 {offsets = [0, 0], sizes = [2, 16], strides = [1, 1]} : vector<2x64xf32> to vector<2x16xf32>
    %86 = arith.negf %85 : vector<2x16xf32>
    %87 = math.exp %86 : vector<2x16xf32>
    %cst_47 = arith.constant 1.000000e+00 : f32
    %88 = vector.broadcast %cst_47 : f32 to vector<2x16xf32>
    %89 = arith.addf %88, %87 : vector<2x16xf32>
    %90 = arith.divf %88, %89 : vector<2x16xf32>
    %91 = vector.extract_strided_slice %84 {offsets = [0, 16], sizes = [2, 16], strides = [1, 1]} : vector<2x64xf32> to vector<2x16xf32>
    %92 = arith.negf %91 : vector<2x16xf32>
    %93 = math.exp %92 : vector<2x16xf32>
    %cst_48 = arith.constant 1.000000e+00 : f32
    %94 = vector.broadcast %cst_48 : f32 to vector<2x16xf32>
    %95 = arith.addf %94, %93 : vector<2x16xf32>
    %96 = arith.divf %94, %95 : vector<2x16xf32>
    %97 = vector.extract_strided_slice %84 {offsets = [0, 32], sizes = [2, 16], strides = [1, 1]} : vector<2x64xf32> to vector<2x16xf32>
    %98 = math.tanh %97 : vector<2x16xf32>
    %99 = vector.extract_strided_slice %84 {offsets = [0, 48], sizes = [2, 16], strides = [1, 1]} : vector<2x64xf32> to vector<2x16xf32>
    %100 = arith.negf %99 : vector<2x16xf32>
    %101 = math.exp %100 : vector<2x16xf32>
    %cst_49 = arith.constant 1.000000e+00 : f32
    %102 = vector.broadcast %cst_49 : f32 to vector<2x16xf32>
    %103 = arith.addf %102, %101 : vector<2x16xf32>
    %104 = arith.divf %102, %103 : vector<2x16xf32>
    %105 = arith.mulf %96, %82 : vector<2x16xf32>
    %106 = arith.mulf %90, %98 : vector<2x16xf32>
    %107 = arith.addf %105, %106 : vector<2x16xf32>
    %108 = math.tanh %107 : vector<2x16xf32>
    %109 = arith.mulf %104, %108 : vector<2x16xf32>
    %c2 = arith.constant 2 : index
    %c0_50 = arith.constant 0 : index
    %c0_51 = arith.constant 0 : index
    %110 = vector.load %arg2[%c2, %c0_50, %c0_51] : memref<4x2x64xf32, #tpu.memory_space<vmem>>, vector<1x2x64xf32>
    %111 = vector.shape_cast %110 : vector<1x2x64xf32> to vector<2x64xf32>
    %c0_52 = arith.constant 0 : index
    %c0_53 = arith.constant 0 : index
    %112 = vector.load %arg8[%c0_52, %c0_53] : memref<2x16xf32, #tpu.memory_space<vmem>>, vector<2x16xf32>
    %c0_54 = arith.constant 0 : index
    %c0_55 = arith.constant 0 : index
    %113 = vector.load %arg9[%c0_54, %c0_55] : memref<2x16xf32, #tpu.memory_space<vmem>>, vector<2x16xf32>
    %cst_56 = arith.constant dense<0.000000e+00> : vector<2x64xf32>
    %114 = tpu.matmul %112, %6, %cst_56 {dimension_numbers = #tpu.dot_dimension_numbers<[1], [0], [0], [1], [0, 0, 1, 1], [], []>} : vector<2x16xf32>, vector<16x64xf32>, vector<2x64xf32> -> vector<2x64xf32>
    %115 = arith.addf %111, %114 : vector<2x64xf32>
    %116 = vector.extract_strided_slice %115 {offsets = [0, 0], sizes = [2, 16], strides = [1, 1]} : vector<2x64xf32> to vector<2x16xf32>
    %117 = arith.negf %116 : vector<2x16xf32>
    %118 = math.exp %117 : vector<2x16xf32>
    %cst_57 = arith.constant 1.000000e+00 : f32
    %119 = vector.broadcast %cst_57 : f32 to vector<2x16xf32>
    %120 = arith.addf %119, %118 : vector<2x16xf32>
    %121 = arith.divf %119, %120 : vector<2x16xf32>
    %122 = vector.extract_strided_slice %115 {offsets = [0, 16], sizes = [2, 16], strides = [1, 1]} : vector<2x64xf32> to vector<2x16xf32>
    %123 = arith.negf %122 : vector<2x16xf32>
    %124 = math.exp %123 : vector<2x16xf32>
    %cst_58 = arith.constant 1.000000e+00 : f32
    %125 = vector.broadcast %cst_58 : f32 to vector<2x16xf32>
    %126 = arith.addf %125, %124 : vector<2x16xf32>
    %127 = arith.divf %125, %126 : vector<2x16xf32>
    %128 = vector.extract_strided_slice %115 {offsets = [0, 32], sizes = [2, 16], strides = [1, 1]} : vector<2x64xf32> to vector<2x16xf32>
    %129 = math.tanh %128 : vector<2x16xf32>
    %130 = vector.extract_strided_slice %115 {offsets = [0, 48], sizes = [2, 16], strides = [1, 1]} : vector<2x64xf32> to vector<2x16xf32>
    %131 = arith.negf %130 : vector<2x16xf32>
    %132 = math.exp %131 : vector<2x16xf32>
    %cst_59 = arith.constant 1.000000e+00 : f32
    %133 = vector.broadcast %cst_59 : f32 to vector<2x16xf32>
    %134 = arith.addf %133, %132 : vector<2x16xf32>
    %135 = arith.divf %133, %134 : vector<2x16xf32>
    %136 = arith.mulf %127, %113 : vector<2x16xf32>
    %137 = arith.mulf %121, %129 : vector<2x16xf32>
    %138 = arith.addf %136, %137 : vector<2x16xf32>
    %139 = math.tanh %138 : vector<2x16xf32>
    %140 = arith.mulf %135, %139 : vector<2x16xf32>
    %c0_60 = arith.constant 0 : index
    %c0_61 = arith.constant 0 : index
    %141 = vector.load %arg6[%c0_60, %c0_61] : memref<2x16xf32, #tpu.memory_space<vmem>>, vector<2x16xf32>
    tpu.vector_store %arg6[%c0_60, %c0_61], %109 {strides = array<i32>} : memref<2x16xf32, #tpu.memory_space<vmem>>, vector<2x16xf32>,
    %c0_62 = arith.constant 0 : index
    %c0_63 = arith.constant 0 : index
    %142 = vector.load %arg7[%c0_62, %c0_63] : memref<2x16xf32, #tpu.memory_space<vmem>>, vector<2x16xf32>
    tpu.vector_store %arg7[%c0_62, %c0_63], %107 {strides = array<i32>} : memref<2x16xf32, #tpu.memory_space<vmem>>, vector<2x16xf32>,
    %c0_64 = arith.constant 0 : index
    %c0_65 = arith.constant 0 : index
    %143 = vector.load %arg8[%c0_64, %c0_65] : memref<2x16xf32, #tpu.memory_space<vmem>>, vector<2x16xf32>
    tpu.vector_store %arg8[%c0_64, %c0_65], %140 {strides = array<i32>} : memref<2x16xf32, #tpu.memory_space<vmem>>, vector<2x16xf32>,
    %c0_66 = arith.constant 0 : index
    %c0_67 = arith.constant 0 : index
    %144 = vector.load %arg9[%c0_66, %c0_67] : memref<2x16xf32, #tpu.memory_space<vmem>>, vector<2x16xf32>
    tpu.vector_store %arg9[%c0_66, %c0_67], %138 {strides = array<i32>} : memref<2x16xf32, #tpu.memory_space<vmem>>, vector<2x16xf32>,
    %c1_68 = arith.constant 1 : index
    %c0_69 = arith.constant 0 : index
    %c0_70 = arith.constant 0 : index
    %145 = vector.load %arg4[%c1_68, %c0_69, %c0_70] : memref<4x2x16xf32, #tpu.memory_space<vmem>>, vector<1x2x16xf32>
    %146 = vector.shape_cast %145 : vector<1x2x16xf32> to vector<2x16xf32>
    %147 = vector.shape_cast %109 : vector<2x16xf32> to vector<1x2x16xf32>
    tpu.vector_store %arg4[%c1_68, %c0_69, %c0_70], %147 {strides = array<i32>} : memref<4x2x16xf32, #tpu.memory_space<vmem>>, vector<1x2x16xf32>,
    %c2_71 = arith.constant 2 : index
    %c0_72 = arith.constant 0 : index
    %c0_73 = arith.constant 0 : index
    %148 = vector.load %arg5[%c2_71, %c0_72, %c0_73] : memref<4x2x16xf32, #tpu.memory_space<vmem>>, vector<1x2x16xf32>
    %149 = vector.shape_cast %148 : vector<1x2x16xf32> to vector<2x16xf32>
    %150 = vector.shape_cast %140 : vector<2x16xf32> to vector<1x2x16xf32>
    tpu.vector_store %arg5[%c2_71, %c0_72, %c0_73], %150 {strides = array<i32>} : memref<4x2x16xf32, #tpu.memory_space<vmem>>, vector<1x2x16xf32>,
    %c2_74 = arith.constant 2 : index
    %c0_75 = arith.constant 0 : index
    %c0_76 = arith.constant 0 : index
    %151 = vector.load %arg1[%c2_74, %c0_75, %c0_76] : memref<4x2x64xf32, #tpu.memory_space<vmem>>, vector<1x2x64xf32>
    %152 = vector.shape_cast %151 : vector<1x2x64xf32> to vector<2x64xf32>
    %c0_77 = arith.constant 0 : index
    %c0_78 = arith.constant 0 : index
    %153 = vector.load %arg6[%c0_77, %c0_78] : memref<2x16xf32, #tpu.memory_space<vmem>>, vector<2x16xf32>
    %c0_79 = arith.constant 0 : index
    %c0_80 = arith.constant 0 : index
    %154 = vector.load %arg7[%c0_79, %c0_80] : memref<2x16xf32, #tpu.memory_space<vmem>>, vector<2x16xf32>
    %cst_81 = arith.constant dense<0.000000e+00> : vector<2x64xf32>
    %155 = tpu.matmul %153, %4, %cst_81 {dimension_numbers = #tpu.dot_dimension_numbers<[1], [0], [0], [1], [0, 0, 1, 1], [], []>} : vector<2x16xf32>, vector<16x64xf32>, vector<2x64xf32> -> vector<2x64xf32>
    %156 = arith.addf %152, %155 : vector<2x64xf32>
    %157 = vector.extract_strided_slice %156 {offsets = [0, 0], sizes = [2, 16], strides = [1, 1]} : vector<2x64xf32> to vector<2x16xf32>
    %158 = arith.negf %157 : vector<2x16xf32>
    %159 = math.exp %158 : vector<2x16xf32>
    %cst_82 = arith.constant 1.000000e+00 : f32
    %160 = vector.broadcast %cst_82 : f32 to vector<2x16xf32>
    %161 = arith.addf %160, %159 : vector<2x16xf32>
    %162 = arith.divf %160, %161 : vector<2x16xf32>
    %163 = vector.extract_strided_slice %156 {offsets = [0, 16], sizes = [2, 16], strides = [1, 1]} : vector<2x64xf32> to vector<2x16xf32>
    %164 = arith.negf %163 : vector<2x16xf32>
    %165 = math.exp %164 : vector<2x16xf32>
    %cst_83 = arith.constant 1.000000e+00 : f32
    %166 = vector.broadcast %cst_83 : f32 to vector<2x16xf32>
    %167 = arith.addf %166, %165 : vector<2x16xf32>
    %168 = arith.divf %166, %167 : vector<2x16xf32>
    %169 = vector.extract_strided_slice %156 {offsets = [0, 32], sizes = [2, 16], strides = [1, 1]} : vector<2x64xf32> to vector<2x16xf32>
    %170 = math.tanh %169 : vector<2x16xf32>
    %171 = vector.extract_strided_slice %156 {offsets = [0, 48], sizes = [2, 16], strides = [1, 1]} : vector<2x64xf32> to vector<2x16xf32>
    %172 = arith.negf %171 : vector<2x16xf32>
    %173 = math.exp %172 : vector<2x16xf32>
    %cst_84 = arith.constant 1.000000e+00 : f32
    %174 = vector.broadcast %cst_84 : f32 to vector<2x16xf32>
    %175 = arith.addf %174, %173 : vector<2x16xf32>
    %176 = arith.divf %174, %175 : vector<2x16xf32>
    %177 = arith.mulf %168, %154 : vector<2x16xf32>
    %178 = arith.mulf %162, %170 : vector<2x16xf32>
    %179 = arith.addf %177, %178 : vector<2x16xf32>
    %180 = math.tanh %179 : vector<2x16xf32>
    %181 = arith.mulf %176, %180 : vector<2x16xf32>
    %c1_85 = arith.constant 1 : index
    %c0_86 = arith.constant 0 : index
    %c0_87 = arith.constant 0 : index
    %182 = vector.load %arg2[%c1_85, %c0_86, %c0_87] : memref<4x2x64xf32, #tpu.memory_space<vmem>>, vector<1x2x64xf32>
    %183 = vector.shape_cast %182 : vector<1x2x64xf32> to vector<2x64xf32>
    %c0_88 = arith.constant 0 : index
    %c0_89 = arith.constant 0 : index
    %184 = vector.load %arg8[%c0_88, %c0_89] : memref<2x16xf32, #tpu.memory_space<vmem>>, vector<2x16xf32>
    %c0_90 = arith.constant 0 : index
    %c0_91 = arith.constant 0 : index
    %185 = vector.load %arg9[%c0_90, %c0_91] : memref<2x16xf32, #tpu.memory_space<vmem>>, vector<2x16xf32>
    %cst_92 = arith.constant dense<0.000000e+00> : vector<2x64xf32>
    %186 = tpu.matmul %184, %6, %cst_92 {dimension_numbers = #tpu.dot_dimension_numbers<[1], [0], [0], [1], [0, 0, 1, 1], [], []>} : vector<2x16xf32>, vector<16x64xf32>, vector<2x64xf32> -> vector<2x64xf32>
    %187 = arith.addf %183, %186 : vector<2x64xf32>
    %188 = vector.extract_strided_slice %187 {offsets = [0, 0], sizes = [2, 16], strides = [1, 1]} : vector<2x64xf32> to vector<2x16xf32>
    %189 = arith.negf %188 : vector<2x16xf32>
    %190 = math.exp %189 : vector<2x16xf32>
    %cst_93 = arith.constant 1.000000e+00 : f32
    %191 = vector.broadcast %cst_93 : f32 to vector<2x16xf32>
    %192 = arith.addf %191, %190 : vector<2x16xf32>
    %193 = arith.divf %191, %192 : vector<2x16xf32>
    %194 = vector.extract_strided_slice %187 {offsets = [0, 16], sizes = [2, 16], strides = [1, 1]} : vector<2x64xf32> to vector<2x16xf32>
    %195 = arith.negf %194 : vector<2x16xf32>
    %196 = math.exp %195 : vector<2x16xf32>
    %cst_94 = arith.constant 1.000000e+00 : f32
    %197 = vector.broadcast %cst_94 : f32 to vector<2x16xf32>
    %198 = arith.addf %197, %196 : vector<2x16xf32>
    %199 = arith.divf %197, %198 : vector<2x16xf32>
    %200 = vector.extract_strided_slice %187 {offsets = [0, 32], sizes = [2, 16], strides = [1, 1]} : vector<2x64xf32> to vector<2x16xf32>
    %201 = math.tanh %200 : vector<2x16xf32>
    %202 = vector.extract_strided_slice %187 {offsets = [0, 48], sizes = [2, 16], strides = [1, 1]} : vector<2x64xf32> to vector<2x16xf32>
    %203 = arith.negf %202 : vector<2x16xf32>
    %204 = math.exp %203 : vector<2x16xf32>
    %cst_95 = arith.constant 1.000000e+00 : f32
    %205 = vector.broadcast %cst_95 : f32 to vector<2x16xf32>
    %206 = arith.addf %205, %204 : vector<2x16xf32>
    %207 = arith.divf %205, %206 : vector<2x16xf32>
    %208 = arith.mulf %199, %185 : vector<2x16xf32>
    %209 = arith.mulf %193, %201 : vector<2x16xf32>
    %210 = arith.addf %208, %209 : vector<2x16xf32>
    %211 = math.tanh %210 : vector<2x16xf32>
    %212 = arith.mulf %207, %211 : vector<2x16xf32>
    %c0_96 = arith.constant 0 : index
    %c0_97 = arith.constant 0 : index
    %213 = vector.load %arg6[%c0_96, %c0_97] : memref<2x16xf32, #tpu.memory_space<vmem>>, vector<2x16xf32>
    tpu.vector_store %arg6[%c0_96, %c0_97], %181 {strides = array<i32>} : memref<2x16xf32, #tpu.memory_space<vmem>>, vector<2x16xf32>,
    %c0_98 = arith.constant 0 : index
    %c0_99 = arith.constant 0 : index
    %214 = vector.load %arg7[%c0_98, %c0_99] : memref<2x16xf32, #tpu.memory_space<vmem>>, vector<2x16xf32>
    tpu.vector_store %arg7[%c0_98, %c0_99], %179 {strides = array<i32>} : memref<2x16xf32, #tpu.memory_space<vmem>>, vector<2x16xf32>,
    %c0_100 = arith.constant 0 : index
    %c0_101 = arith.constant 0 : index
    %215 = vector.load %arg8[%c0_100, %c0_101] : memref<2x16xf32, #tpu.memory_space<vmem>>, vector<2x16xf32>
    tpu.vector_store %arg8[%c0_100, %c0_101], %212 {strides = array<i32>} : memref<2x16xf32, #tpu.memory_space<vmem>>, vector<2x16xf32>,
    %c0_102 = arith.constant 0 : index
    %c0_103 = arith.constant 0 : index
    %216 = vector.load %arg9[%c0_102, %c0_103] : memref<2x16xf32, #tpu.memory_space<vmem>>, vector<2x16xf32>
    tpu.vector_store %arg9[%c0_102, %c0_103], %210 {strides = array<i32>} : memref<2x16xf32, #tpu.memory_space<vmem>>, vector<2x16xf32>,
    %c2_104 = arith.constant 2 : index
    %c0_105 = arith.constant 0 : index
    %c0_106 = arith.constant 0 : index
    %217 = vector.load %arg4[%c2_104, %c0_105, %c0_106] : memref<4x2x16xf32, #tpu.memory_space<vmem>>, vector<1x2x16xf32>
    %218 = vector.shape_cast %217 : vector<1x2x16xf32> to vector<2x16xf32>
    %219 = vector.shape_cast %181 : vector<2x16xf32> to vector<1x2x16xf32>
    tpu.vector_store %arg4[%c2_104, %c0_105, %c0_106], %219 {strides = array<i32>} : memref<4x2x16xf32, #tpu.memory_space<vmem>>, vector<1x2x16xf32>,
    %c1_107 = arith.constant 1 : index
    %c0_108 = arith.constant 0 : index
    %c0_109 = arith.constant 0 : index
    %220 = vector.load %arg5[%c1_107, %c0_108, %c0_109] : memref<4x2x16xf32, #tpu.memory_space<vmem>>, vector<1x2x16xf32>
    %221 = vector.shape_cast %220 : vector<1x2x16xf32> to vector<2x16xf32>
    %222 = vector.shape_cast %212 : vector<2x16xf32> to vector<1x2x16xf32>
    tpu.vector_store %arg5[%c1_107, %c0_108, %c0_109], %222 {strides = array<i32>} : memref<4x2x16xf32, #tpu.memory_space<vmem>>, vector<1x2x16xf32>,
    %c3_110 = arith.constant 3 : index
    %c0_111 = arith.constant 0 : index
    %c0_112 = arith.constant 0 : index
    %223 = vector.load %arg1[%c3_110, %c0_111, %c0_112] : memref<4x2x64xf32, #tpu.memory_space<vmem>>, vector<1x2x64xf32>
    %224 = vector.shape_cast %223 : vector<1x2x64xf32> to vector<2x64xf32>
    %c0_113 = arith.constant 0 : index
    %c0_114 = arith.constant 0 : index
    %225 = vector.load %arg6[%c0_113, %c0_114] : memref<2x16xf32, #tpu.memory_space<vmem>>, vector<2x16xf32>
    %c0_115 = arith.constant 0 : index
    %c0_116 = arith.constant 0 : index
    %226 = vector.load %arg7[%c0_115, %c0_116] : memref<2x16xf32, #tpu.memory_space<vmem>>, vector<2x16xf32>
    %cst_117 = arith.constant dense<0.000000e+00> : vector<2x64xf32>
    %227 = tpu.matmul %225, %4, %cst_117 {dimension_numbers = #tpu.dot_dimension_numbers<[1], [0], [0], [1], [0, 0, 1, 1], [], []>} : vector<2x16xf32>, vector<16x64xf32>, vector<2x64xf32> -> vector<2x64xf32>
    %228 = arith.addf %224, %227 : vector<2x64xf32>
    %229 = vector.extract_strided_slice %228 {offsets = [0, 0], sizes = [2, 16], strides = [1, 1]} : vector<2x64xf32> to vector<2x16xf32>
    %230 = arith.negf %229 : vector<2x16xf32>
    %231 = math.exp %230 : vector<2x16xf32>
    %cst_118 = arith.constant 1.000000e+00 : f32
    %232 = vector.broadcast %cst_118 : f32 to vector<2x16xf32>
    %233 = arith.addf %232, %231 : vector<2x16xf32>
    %234 = arith.divf %232, %233 : vector<2x16xf32>
    %235 = vector.extract_strided_slice %228 {offsets = [0, 16], sizes = [2, 16], strides = [1, 1]} : vector<2x64xf32> to vector<2x16xf32>
    %236 = arith.negf %235 : vector<2x16xf32>
    %237 = math.exp %236 : vector<2x16xf32>
    %cst_119 = arith.constant 1.000000e+00 : f32
    %238 = vector.broadcast %cst_119 : f32 to vector<2x16xf32>
    %239 = arith.addf %238, %237 : vector<2x16xf32>
    %240 = arith.divf %238, %239 : vector<2x16xf32>
    %241 = vector.extract_strided_slice %228 {offsets = [0, 32], sizes = [2, 16], strides = [1, 1]} : vector<2x64xf32> to vector<2x16xf32>
    %242 = math.tanh %241 : vector<2x16xf32>
    %243 = vector.extract_strided_slice %228 {offsets = [0, 48], sizes = [2, 16], strides = [1, 1]} : vector<2x64xf32> to vector<2x16xf32>
    %244 = arith.negf %243 : vector<2x16xf32>
    %245 = math.exp %244 : vector<2x16xf32>
    %cst_120 = arith.constant 1.000000e+00 : f32
    %246 = vector.broadcast %cst_120 : f32 to vector<2x16xf32>
    %247 = arith.addf %246, %245 : vector<2x16xf32>
    %248 = arith.divf %246, %247 : vector<2x16xf32>
    %249 = arith.mulf %240, %226 : vector<2x16xf32>
    %250 = arith.mulf %234, %242 : vector<2x16xf32>
    %251 = arith.addf %249, %250 : vector<2x16xf32>
    %252 = math.tanh %251 : vector<2x16xf32>
    %253 = arith.mulf %248, %252 : vector<2x16xf32>
    %c0_121 = arith.constant 0 : index
    %c0_122 = arith.constant 0 : index
    %c0_123 = arith.constant 0 : index
    %254 = vector.load %arg2[%c0_121, %c0_122, %c0_123] : memref<4x2x64xf32, #tpu.memory_space<vmem>>, vector<1x2x64xf32>
    %255 = vector.shape_cast %254 : vector<1x2x64xf32> to vector<2x64xf32>
    %c0_124 = arith.constant 0 : index
    %c0_125 = arith.constant 0 : index
    %256 = vector.load %arg8[%c0_124, %c0_125] : memref<2x16xf32, #tpu.memory_space<vmem>>, vector<2x16xf32>
    %c0_126 = arith.constant 0 : index
    %c0_127 = arith.constant 0 : index
    %257 = vector.load %arg9[%c0_126, %c0_127] : memref<2x16xf32, #tpu.memory_space<vmem>>, vector<2x16xf32>
    %cst_128 = arith.constant dense<0.000000e+00> : vector<2x64xf32>
    %258 = tpu.matmul %256, %6, %cst_128 {dimension_numbers = #tpu.dot_dimension_numbers<[1], [0], [0], [1], [0, 0, 1, 1], [], []>} : vector<2x16xf32>, vector<16x64xf32>, vector<2x64xf32> -> vector<2x64xf32>
    %259 = arith.addf %255, %258 : vector<2x64xf32>
    %260 = vector.extract_strided_slice %259 {offsets = [0, 0], sizes = [2, 16], strides = [1, 1]} : vector<2x64xf32> to vector<2x16xf32>
    %261 = arith.negf %260 : vector<2x16xf32>
    %262 = math.exp %261 : vector<2x16xf32>
    %cst_129 = arith.constant 1.000000e+00 : f32
    %263 = vector.broadcast %cst_129 : f32 to vector<2x16xf32>
    %264 = arith.addf %263, %262 : vector<2x16xf32>
    %265 = arith.divf %263, %264 : vector<2x16xf32>
    %266 = vector.extract_strided_slice %259 {offsets = [0, 16], sizes = [2, 16], strides = [1, 1]} : vector<2x64xf32> to vector<2x16xf32>
    %267 = arith.negf %266 : vector<2x16xf32>
    %268 = math.exp %267 : vector<2x16xf32>
    %cst_130 = arith.constant 1.000000e+00 : f32
    %269 = vector.broadcast %cst_130 : f32 to vector<2x16xf32>
    %270 = arith.addf %269, %268 : vector<2x16xf32>
    %271 = arith.divf %269, %270 : vector<2x16xf32>
    %272 = vector.extract_strided_slice %259 {offsets = [0, 32], sizes = [2, 16], strides = [1, 1]} : vector<2x64xf32> to vector<2x16xf32>
    %273 = math.tanh %272 : vector<2x16xf32>
    %274 = vector.extract_strided_slice %259 {offsets = [0, 48], sizes = [2, 16], strides = [1, 1]} : vector<2x64xf32> to vector<2x16xf32>
    %275 = arith.negf %274 : vector<2x16xf32>
    %276 = math.exp %275 : vector<2x16xf32>
    %cst_131 = arith.constant 1.000000e+00 : f32
    %277 = vector.broadcast %cst_131 : f32 to vector<2x16xf32>
    %278 = arith.addf %277, %276 : vector<2x16xf32>
    %279 = arith.divf %277, %278 : vector<2x16xf32>
    %280 = arith.mulf %271, %257 : vector<2x16xf32>
    %281 = arith.mulf %265, %273 : vector<2x16xf32>
    %282 = arith.addf %280, %281 : vector<2x16xf32>
    %283 = math.tanh %282 : vector<2x16xf32>
    %284 = arith.mulf %279, %283 : vector<2x16xf32>
    %c0_132 = arith.constant 0 : index
    %c0_133 = arith.constant 0 : index
    %285 = vector.load %arg6[%c0_132, %c0_133] : memref<2x16xf32, #tpu.memory_space<vmem>>, vector<2x16xf32>
    tpu.vector_store %arg6[%c0_132, %c0_133], %253 {strides = array<i32>} : memref<2x16xf32, #tpu.memory_space<vmem>>, vector<2x16xf32>,
    %c0_134 = arith.constant 0 : index
    %c0_135 = arith.constant 0 : index
    %286 = vector.load %arg7[%c0_134, %c0_135] : memref<2x16xf32, #tpu.memory_space<vmem>>, vector<2x16xf32>
    tpu.vector_store %arg7[%c0_134, %c0_135], %251 {strides = array<i32>} : memref<2x16xf32, #tpu.memory_space<vmem>>, vector<2x16xf32>,
    %c0_136 = arith.constant 0 : index
    %c0_137 = arith.constant 0 : index
    %287 = vector.load %arg8[%c0_136, %c0_137] : memref<2x16xf32, #tpu.memory_space<vmem>>, vector<2x16xf32>
    tpu.vector_store %arg8[%c0_136, %c0_137], %284 {strides = array<i32>} : memref<2x16xf32, #tpu.memory_space<vmem>>, vector<2x16xf32>,
    %c0_138 = arith.constant 0 : index
    %c0_139 = arith.constant 0 : index
    %288 = vector.load %arg9[%c0_138, %c0_139] : memref<2x16xf32, #tpu.memory_space<vmem>>, vector<2x16xf32>
    tpu.vector_store %arg9[%c0_138, %c0_139], %282 {strides = array<i32>} : memref<2x16xf32, #tpu.memory_space<vmem>>, vector<2x16xf32>,
    %c3_140 = arith.constant 3 : index
    %c0_141 = arith.constant 0 : index
    %c0_142 = arith.constant 0 : index
    %289 = vector.load %arg4[%c3_140, %c0_141, %c0_142] : memref<4x2x16xf32, #tpu.memory_space<vmem>>, vector<1x2x16xf32>
    %290 = vector.shape_cast %289 : vector<1x2x16xf32> to vector<2x16xf32>
    %291 = vector.shape_cast %253 : vector<2x16xf32> to vector<1x2x16xf32>
    tpu.vector_store %arg4[%c3_140, %c0_141, %c0_142], %291 {strides = array<i32>} : memref<4x2x16xf32, #tpu.memory_space<vmem>>, vector<1x2x16xf32>,
    %c0_143 = arith.constant 0 : index
    %c0_144 = arith.constant 0 : index
    %c0_145 = arith.constant 0 : index
    %292 = vector.load %arg5[%c0_143, %c0_144, %c0_145] : memref<4x2x16xf32, #tpu.memory_space<vmem>>, vector<1x2x16xf32>
    %293 = vector.shape_cast %292 : vector<1x2x16xf32> to vector<2x16xf32>
    %294 = vector.shape_cast %284 : vector<2x16xf32> to vector<1x2x16xf32>
    tpu.vector_store %arg5[%c0_143, %c0_144, %c0_145], %294 {strides = array<i32>} : memref<4x2x16xf32, #tpu.memory_space<vmem>>, vector<1x2x16xf32>,
    return
  }
  func.func @transform_0(%arg0: i32) -> (i32, i32, i32) {
    %c0_i32 = arith.constant 0 : i32
    %c0_i32_0 = arith.constant 0 : i32
    %c0_i32_1 = arith.constant 0 : i32
    return %arg0, %c0_i32, %c0_i32_0 : i32, i32, i32
  }
  func.func @transform_1(%arg0: i32) -> (i32, i32, i32) {
    %c1_i32 = arith.constant 1 : i32
    %0 = arith.subi %c1_i32, %arg0 : i32
    %c0_i32 = arith.constant 0 : i32
    %c0_i32_0 = arith.constant 0 : i32
    %c0_i32_1 = arith.constant 0 : i32
    return %0, %c0_i32, %c0_i32_0 : i32, i32, i32
  }
  func.func @transform_2(%arg0: i32) -> (i32, i32, i32) {
    %c0_i32 = arith.constant 0 : i32
    %c0_i32_0 = arith.constant 0 : i32
    %c0_i32_1 = arith.constant 0 : i32
    %c0_i32_2 = arith.constant 0 : i32
    return %c0_i32, %c0_i32_0, %c0_i32_1 : i32, i32, i32
  }
  func.func @transform_3(%arg0: i32) -> (i32, i32, i32) {
    %c0_i32 = arith.constant 0 : i32
    %c0_i32_0 = arith.constant 0 : i32
    %c0_i32_1 = arith.constant 0 : i32
    return %arg0, %c0_i32, %c0_i32_0 : i32, i32, i32
  }
  func.func @transform_4(%arg0: i32) -> (i32, i32, i32) {
    %c1_i32 = arith.constant 1 : i32
    %0 = arith.subi %c1_i32, %arg0 : i32
    %c0_i32 = arith.constant 0 : i32
    %c0_i32_0 = arith.constant 0 : i32
    %c0_i32_1 = arith.constant 0 : i32
    return %0, %c0_i32, %c0_i32_0 : i32, i32, i32
  }
}

module attributes {stable_mosaic.version = 11 : i64} {
  func.func @_head_kernel(%arg0: i32, %arg1: memref<1x8x16xf32, #tpu.memory_space<vmem>>, %arg2: memref<1x8x16xf32, #tpu.memory_space<vmem>>, %arg3: memref<16x128xf32, #tpu.memory_space<vmem>>, %arg4: memref<16x128xf32, #tpu.memory_space<vmem>>, %arg5: memref<1x128xf32, #tpu.memory_space<vmem>>, %arg6: memref<64x32xf32, #tpu.memory_space<vmem>>, %arg7: memref<1x32xf32, #tpu.memory_space<vmem>>, %arg8: memref<64x32xf32, #tpu.memory_space<vmem>>, %arg9: memref<1x32xf32, #tpu.memory_space<vmem>>, %arg10: memref<32x160xf32, #tpu.memory_space<vmem>>, %arg11: memref<1x160xf32, #tpu.memory_space<vmem>>, %arg12: memref<32x5xf32, #tpu.memory_space<vmem>>, %arg13: memref<1x5xf32, #tpu.memory_space<vmem>>, %arg14: memref<1x5x8x8xf32, #tpu.memory_space<vmem>>) attributes {dimension_semantics = [#tpu.dimension_semantics<parallel>], iteration_bounds = array<i64: 2>, scalar_prefetch = 0 : i64, scratch_operands = 0 : i64, tpu.core_type = #tpu.core_type<tc>, window_params = [{transform_indices = @transform_0, window_bounds = array<i64: 1, 8, 16>}, {transform_indices = @transform_1, window_bounds = array<i64: 1, 8, 16>}, {pipeline_mode = #tpu.pipeline_mode<synchronous>, transform_indices = @transform_2, window_bounds = array<i64: 16, 128>}, {pipeline_mode = #tpu.pipeline_mode<synchronous>, transform_indices = @transform_3, window_bounds = array<i64: 16, 128>}, {pipeline_mode = #tpu.pipeline_mode<synchronous>, transform_indices = @transform_4, window_bounds = array<i64: 1, 128>}, {pipeline_mode = #tpu.pipeline_mode<synchronous>, transform_indices = @transform_5, window_bounds = array<i64: 64, 32>}, {pipeline_mode = #tpu.pipeline_mode<synchronous>, transform_indices = @transform_6, window_bounds = array<i64: 1, 32>}, {pipeline_mode = #tpu.pipeline_mode<synchronous>, transform_indices = @transform_7, window_bounds = array<i64: 64, 32>}, {pipeline_mode = #tpu.pipeline_mode<synchronous>, transform_indices = @transform_8, window_bounds = array<i64: 1, 32>}, {pipeline_mode = #tpu.pipeline_mode<synchronous>, transform_indices = @transform_9, window_bounds = array<i64: 32, 160>}, {pipeline_mode = #tpu.pipeline_mode<synchronous>, transform_indices = @transform_10, window_bounds = array<i64: 1, 160>}, {pipeline_mode = #tpu.pipeline_mode<synchronous>, transform_indices = @transform_11, window_bounds = array<i64: 32, 5>}, {pipeline_mode = #tpu.pipeline_mode<synchronous>, transform_indices = @transform_12, window_bounds = array<i64: 1, 5>}, {transform_indices = @transform_13, window_bounds = array<i64: 1, 5, 8, 8>}]} {
    %c0 = arith.constant 0 : index
    %c0_0 = arith.constant 0 : index
    %c0_1 = arith.constant 0 : index
    %0 = vector.load %arg1[%c0, %c0_0, %c0_1] : memref<1x8x16xf32, #tpu.memory_space<vmem>>, vector<1x8x16xf32>
    %1 = vector.shape_cast %0 : vector<1x8x16xf32> to vector<8x16xf32>
    %c0_2 = arith.constant 0 : index
    %c0_3 = arith.constant 0 : index
    %c0_4 = arith.constant 0 : index
    %2 = vector.load %arg2[%c0_2, %c0_3, %c0_4] : memref<1x8x16xf32, #tpu.memory_space<vmem>>, vector<1x8x16xf32>
    %3 = vector.shape_cast %2 : vector<1x8x16xf32> to vector<8x16xf32>
    %c0_5 = arith.constant 0 : index
    %c0_6 = arith.constant 0 : index
    %4 = vector.load %arg3[%c0_5, %c0_6] : memref<16x128xf32, #tpu.memory_space<vmem>>, vector<16x128xf32>
    %cst = arith.constant dense<0.000000e+00> : vector<8x128xf32>
    %5 = tpu.matmul %1, %4, %cst {dimension_numbers = #tpu.dot_dimension_numbers<[1], [0], [0], [1], [0, 0, 1, 1], [], []>} : vector<8x16xf32>, vector<16x128xf32>, vector<8x128xf32> -> vector<8x128xf32>
    %c0_7 = arith.constant 0 : index
    %c0_8 = arith.constant 0 : index
    %6 = vector.load %arg4[%c0_7, %c0_8] : memref<16x128xf32, #tpu.memory_space<vmem>>, vector<16x128xf32>
    %cst_9 = arith.constant dense<0.000000e+00> : vector<8x128xf32>
    %7 = tpu.matmul %3, %6, %cst_9 {dimension_numbers = #tpu.dot_dimension_numbers<[1], [0], [0], [1], [0, 0, 1, 1], [], []>} : vector<8x16xf32>, vector<16x128xf32>, vector<8x128xf32> -> vector<8x128xf32>
    %8 = arith.addf %5, %7 : vector<8x128xf32>
    %c0_10 = arith.constant 0 : index
    %c0_11 = arith.constant 0 : index
    %9 = vector.load %arg5[%c0_10, %c0_11] : memref<1x128xf32, #tpu.memory_space<vmem>>, vector<1x128xf32>
    %10 = vector.broadcast %9 : vector<1x128xf32> to vector<8x128xf32>
    %11 = arith.addf %8, %10 : vector<8x128xf32>
    %cst_12 = arith.constant 0.000000e+00 : f32
    %12 = vector.broadcast %cst_12 : f32 to vector<8x128xf32>
    %13 = arith.maximumf %11, %12 : vector<8x128xf32>
    %14 = vector.extract_strided_slice %13 {offsets = [0, 0], sizes = [8, 64], strides = [1, 1]} : vector<8x128xf32> to vector<8x64xf32>
    %15 = vector.extract_strided_slice %13 {offsets = [0, 64], sizes = [8, 64], strides = [1, 1]} : vector<8x128xf32> to vector<8x64xf32>
    %c0_13 = arith.constant 0 : index
    %c0_14 = arith.constant 0 : index
    %16 = vector.load %arg6[%c0_13, %c0_14] : memref<64x32xf32, #tpu.memory_space<vmem>>, vector<64x32xf32>
    %cst_15 = arith.constant dense<0.000000e+00> : vector<8x32xf32>
    %17 = tpu.matmul %14, %16, %cst_15 {dimension_numbers = #tpu.dot_dimension_numbers<[1], [0], [0], [1], [0, 0, 1, 1], [], []>} : vector<8x64xf32>, vector<64x32xf32>, vector<8x32xf32> -> vector<8x32xf32>
    %c0_16 = arith.constant 0 : index
    %c0_17 = arith.constant 0 : index
    %18 = vector.load %arg7[%c0_16, %c0_17] : memref<1x32xf32, #tpu.memory_space<vmem>>, vector<1x32xf32>
    %19 = vector.broadcast %18 : vector<1x32xf32> to vector<8x32xf32>
    %20 = arith.addf %17, %19 : vector<8x32xf32>
    %c0_18 = arith.constant 0 : index
    %c0_19 = arith.constant 0 : index
    %21 = vector.load %arg8[%c0_18, %c0_19] : memref<64x32xf32, #tpu.memory_space<vmem>>, vector<64x32xf32>
    %cst_20 = arith.constant dense<0.000000e+00> : vector<8x32xf32>
    %22 = tpu.matmul %15, %21, %cst_20 {dimension_numbers = #tpu.dot_dimension_numbers<[1], [0], [0], [1], [0, 0, 1, 1], [], []>} : vector<8x64xf32>, vector<64x32xf32>, vector<8x32xf32> -> vector<8x32xf32>
    %c0_21 = arith.constant 0 : index
    %c0_22 = arith.constant 0 : index
    %23 = vector.load %arg9[%c0_21, %c0_22] : memref<1x32xf32, #tpu.memory_space<vmem>>, vector<1x32xf32>
    %24 = vector.broadcast %23 : vector<1x32xf32> to vector<8x32xf32>
    %25 = arith.addf %22, %24 : vector<8x32xf32>
    %26 = tpu.transpose %25, [1, 0] : vector<8x32xf32> -> vector<32x8xf32>
    %c0_23 = arith.constant 0 : index
    %c0_24 = arith.constant 0 : index
    %27 = vector.load %arg10[%c0_23, %c0_24] : memref<32x160xf32, #tpu.memory_space<vmem>>, vector<32x160xf32>
    %cst_25 = arith.constant dense<0.000000e+00> : vector<8x160xf32>
    %28 = tpu.matmul %20, %27, %cst_25 {dimension_numbers = #tpu.dot_dimension_numbers<[1], [0], [0], [1], [0, 0, 1, 1], [], []>} : vector<8x32xf32>, vector<32x160xf32>, vector<8x160xf32> -> vector<8x160xf32>
    %c0_26 = arith.constant 0 : index
    %c0_27 = arith.constant 0 : index
    %29 = vector.load %arg11[%c0_26, %c0_27] : memref<1x160xf32, #tpu.memory_space<vmem>>, vector<1x160xf32>
    %30 = vector.broadcast %29 : vector<1x160xf32> to vector<8x160xf32>
    %31 = arith.addf %28, %30 : vector<8x160xf32>
    %c0_28 = arith.constant 0 : index
    %c0_29 = arith.constant 0 : index
    %32 = vector.load %arg12[%c0_28, %c0_29] : memref<32x5xf32, #tpu.memory_space<vmem>>, vector<32x5xf32>
    %cst_30 = arith.constant dense<0.000000e+00> : vector<8x5xf32>
    %33 = tpu.matmul %20, %32, %cst_30 {dimension_numbers = #tpu.dot_dimension_numbers<[1], [0], [0], [1], [0, 0, 1, 1], [], []>} : vector<8x32xf32>, vector<32x5xf32>, vector<8x5xf32> -> vector<8x5xf32>
    %c0_31 = arith.constant 0 : index
    %c0_32 = arith.constant 0 : index
    %34 = vector.load %arg13[%c0_31, %c0_32] : memref<1x5xf32, #tpu.memory_space<vmem>>, vector<1x5xf32>
    %35 = vector.broadcast %34 : vector<1x5xf32> to vector<8x5xf32>
    %36 = arith.addf %33, %35 : vector<8x5xf32>
    %37 = vector.extract_strided_slice %31 {offsets = [0, 0], sizes = [8, 32], strides = [1, 1]} : vector<8x160xf32> to vector<8x32xf32>
    %cst_33 = arith.constant dense<0.000000e+00> : vector<8x8xf32>
    %38 = tpu.matmul %37, %26, %cst_33 {dimension_numbers = #tpu.dot_dimension_numbers<[1], [0], [0], [1], [0, 0, 1, 1], [], []>} : vector<8x32xf32>, vector<32x8xf32>, vector<8x8xf32> -> vector<8x8xf32>
    %39 = vector.extract_strided_slice %36 {offsets = [0, 0], sizes = [8, 1], strides = [1, 1]} : vector<8x5xf32> to vector<8x1xf32>
    %40 = vector.broadcast %39 : vector<8x1xf32> to vector<8x8xf32>
    %41 = arith.addf %38, %40 : vector<8x8xf32>
    %c0_34 = arith.constant 0 : index
    %c0_35 = arith.constant 0 : index
    %c0_36 = arith.constant 0 : index
    %c0_37 = arith.constant 0 : index
    %42 = vector.load %arg14[%c0_34, %c0_35, %c0_36, %c0_37] : memref<1x5x8x8xf32, #tpu.memory_space<vmem>>, vector<1x1x8x8xf32>
    %43 = vector.shape_cast %42 : vector<1x1x8x8xf32> to vector<8x8xf32>
    %44 = vector.shape_cast %41 : vector<8x8xf32> to vector<1x1x8x8xf32>
    tpu.vector_store %arg14[%c0_34, %c0_35, %c0_36, %c0_37], %44 {strides = array<i32>} : memref<1x5x8x8xf32, #tpu.memory_space<vmem>>, vector<1x1x8x8xf32>,
    %45 = vector.extract_strided_slice %31 {offsets = [0, 32], sizes = [8, 32], strides = [1, 1]} : vector<8x160xf32> to vector<8x32xf32>
    %cst_38 = arith.constant dense<0.000000e+00> : vector<8x8xf32>
    %46 = tpu.matmul %45, %26, %cst_38 {dimension_numbers = #tpu.dot_dimension_numbers<[1], [0], [0], [1], [0, 0, 1, 1], [], []>} : vector<8x32xf32>, vector<32x8xf32>, vector<8x8xf32> -> vector<8x8xf32>
    %47 = vector.extract_strided_slice %36 {offsets = [0, 1], sizes = [8, 1], strides = [1, 1]} : vector<8x5xf32> to vector<8x1xf32>
    %48 = vector.broadcast %47 : vector<8x1xf32> to vector<8x8xf32>
    %49 = arith.addf %46, %48 : vector<8x8xf32>
    %c0_39 = arith.constant 0 : index
    %c1 = arith.constant 1 : index
    %c0_40 = arith.constant 0 : index
    %c0_41 = arith.constant 0 : index
    %50 = vector.load %arg14[%c0_39, %c1, %c0_40, %c0_41] : memref<1x5x8x8xf32, #tpu.memory_space<vmem>>, vector<1x1x8x8xf32>
    %51 = vector.shape_cast %50 : vector<1x1x8x8xf32> to vector<8x8xf32>
    %52 = vector.shape_cast %49 : vector<8x8xf32> to vector<1x1x8x8xf32>
    tpu.vector_store %arg14[%c0_39, %c1, %c0_40, %c0_41], %52 {strides = array<i32>} : memref<1x5x8x8xf32, #tpu.memory_space<vmem>>, vector<1x1x8x8xf32>,
    %53 = vector.extract_strided_slice %31 {offsets = [0, 64], sizes = [8, 32], strides = [1, 1]} : vector<8x160xf32> to vector<8x32xf32>
    %cst_42 = arith.constant dense<0.000000e+00> : vector<8x8xf32>
    %54 = tpu.matmul %53, %26, %cst_42 {dimension_numbers = #tpu.dot_dimension_numbers<[1], [0], [0], [1], [0, 0, 1, 1], [], []>} : vector<8x32xf32>, vector<32x8xf32>, vector<8x8xf32> -> vector<8x8xf32>
    %55 = vector.extract_strided_slice %36 {offsets = [0, 2], sizes = [8, 1], strides = [1, 1]} : vector<8x5xf32> to vector<8x1xf32>
    %56 = vector.broadcast %55 : vector<8x1xf32> to vector<8x8xf32>
    %57 = arith.addf %54, %56 : vector<8x8xf32>
    %c0_43 = arith.constant 0 : index
    %c2 = arith.constant 2 : index
    %c0_44 = arith.constant 0 : index
    %c0_45 = arith.constant 0 : index
    %58 = vector.load %arg14[%c0_43, %c2, %c0_44, %c0_45] : memref<1x5x8x8xf32, #tpu.memory_space<vmem>>, vector<1x1x8x8xf32>
    %59 = vector.shape_cast %58 : vector<1x1x8x8xf32> to vector<8x8xf32>
    %60 = vector.shape_cast %57 : vector<8x8xf32> to vector<1x1x8x8xf32>
    tpu.vector_store %arg14[%c0_43, %c2, %c0_44, %c0_45], %60 {strides = array<i32>} : memref<1x5x8x8xf32, #tpu.memory_space<vmem>>, vector<1x1x8x8xf32>,
    %61 = vector.extract_strided_slice %31 {offsets = [0, 96], sizes = [8, 32], strides = [1, 1]} : vector<8x160xf32> to vector<8x32xf32>
    %cst_46 = arith.constant dense<0.000000e+00> : vector<8x8xf32>
    %62 = tpu.matmul %61, %26, %cst_46 {dimension_numbers = #tpu.dot_dimension_numbers<[1], [0], [0], [1], [0, 0, 1, 1], [], []>} : vector<8x32xf32>, vector<32x8xf32>, vector<8x8xf32> -> vector<8x8xf32>
    %63 = vector.extract_strided_slice %36 {offsets = [0, 3], sizes = [8, 1], strides = [1, 1]} : vector<8x5xf32> to vector<8x1xf32>
    %64 = vector.broadcast %63 : vector<8x1xf32> to vector<8x8xf32>
    %65 = arith.addf %62, %64 : vector<8x8xf32>
    %c0_47 = arith.constant 0 : index
    %c3 = arith.constant 3 : index
    %c0_48 = arith.constant 0 : index
    %c0_49 = arith.constant 0 : index
    %66 = vector.load %arg14[%c0_47, %c3, %c0_48, %c0_49] : memref<1x5x8x8xf32, #tpu.memory_space<vmem>>, vector<1x1x8x8xf32>
    %67 = vector.shape_cast %66 : vector<1x1x8x8xf32> to vector<8x8xf32>
    %68 = vector.shape_cast %65 : vector<8x8xf32> to vector<1x1x8x8xf32>
    tpu.vector_store %arg14[%c0_47, %c3, %c0_48, %c0_49], %68 {strides = array<i32>} : memref<1x5x8x8xf32, #tpu.memory_space<vmem>>, vector<1x1x8x8xf32>,
    %69 = vector.extract_strided_slice %31 {offsets = [0, 128], sizes = [8, 32], strides = [1, 1]} : vector<8x160xf32> to vector<8x32xf32>
    %cst_50 = arith.constant dense<0.000000e+00> : vector<8x8xf32>
    %70 = tpu.matmul %69, %26, %cst_50 {dimension_numbers = #tpu.dot_dimension_numbers<[1], [0], [0], [1], [0, 0, 1, 1], [], []>} : vector<8x32xf32>, vector<32x8xf32>, vector<8x8xf32> -> vector<8x8xf32>
    %71 = vector.extract_strided_slice %36 {offsets = [0, 4], sizes = [8, 1], strides = [1, 1]} : vector<8x5xf32> to vector<8x1xf32>
    %72 = vector.broadcast %71 : vector<8x1xf32> to vector<8x8xf32>
    %73 = arith.addf %70, %72 : vector<8x8xf32>
    %c0_51 = arith.constant 0 : index
    %c4 = arith.constant 4 : index
    %c0_52 = arith.constant 0 : index
    %c0_53 = arith.constant 0 : index
    %74 = vector.load %arg14[%c0_51, %c4, %c0_52, %c0_53] : memref<1x5x8x8xf32, #tpu.memory_space<vmem>>, vector<1x1x8x8xf32>
    %75 = vector.shape_cast %74 : vector<1x1x8x8xf32> to vector<8x8xf32>
    %76 = vector.shape_cast %73 : vector<8x8xf32> to vector<1x1x8x8xf32>
    tpu.vector_store %arg14[%c0_51, %c4, %c0_52, %c0_53], %76 {strides = array<i32>} : memref<1x5x8x8xf32, #tpu.memory_space<vmem>>, vector<1x1x8x8xf32>,
    return
  }
  func.func @transform_0(%arg0: i32) -> (i32, i32, i32) {
    %c0_i32 = arith.constant 0 : i32
    %c0_i32_0 = arith.constant 0 : i32
    %c0_i32_1 = arith.constant 0 : i32
    return %arg0, %c0_i32, %c0_i32_0 : i32, i32, i32
  }
  func.func @transform_1(%arg0: i32) -> (i32, i32, i32) {
    %c0_i32 = arith.constant 0 : i32
    %c0_i32_0 = arith.constant 0 : i32
    %c0_i32_1 = arith.constant 0 : i32
    return %arg0, %c0_i32, %c0_i32_0 : i32, i32, i32
  }
  func.func @transform_2(%arg0: i32) -> (i32, i32) {
    %c0_i32 = arith.constant 0 : i32
    %c0_i32_0 = arith.constant 0 : i32
    %c0_i32_1 = arith.constant 0 : i32
    return %c0_i32, %c0_i32_0 : i32, i32
  }
  func.func @transform_3(%arg0: i32) -> (i32, i32) {
    %c0_i32 = arith.constant 0 : i32
    %c0_i32_0 = arith.constant 0 : i32
    %c0_i32_1 = arith.constant 0 : i32
    return %c0_i32, %c0_i32_0 : i32, i32
  }
  func.func @transform_4(%arg0: i32) -> (i32, i32) {
    %c0_i32 = arith.constant 0 : i32
    %c0_i32_0 = arith.constant 0 : i32
    %c0_i32_1 = arith.constant 0 : i32
    return %c0_i32, %c0_i32_0 : i32, i32
  }
  func.func @transform_5(%arg0: i32) -> (i32, i32) {
    %c0_i32 = arith.constant 0 : i32
    %c0_i32_0 = arith.constant 0 : i32
    %c0_i32_1 = arith.constant 0 : i32
    return %c0_i32, %c0_i32_0 : i32, i32
  }
  func.func @transform_6(%arg0: i32) -> (i32, i32) {
    %c0_i32 = arith.constant 0 : i32
    %c0_i32_0 = arith.constant 0 : i32
    %c0_i32_1 = arith.constant 0 : i32
    return %c0_i32, %c0_i32_0 : i32, i32
  }
  func.func @transform_7(%arg0: i32) -> (i32, i32) {
    %c0_i32 = arith.constant 0 : i32
    %c0_i32_0 = arith.constant 0 : i32
    %c0_i32_1 = arith.constant 0 : i32
    return %c0_i32, %c0_i32_0 : i32, i32
  }
  func.func @transform_8(%arg0: i32) -> (i32, i32) {
    %c0_i32 = arith.constant 0 : i32
    %c0_i32_0 = arith.constant 0 : i32
    %c0_i32_1 = arith.constant 0 : i32
    return %c0_i32, %c0_i32_0 : i32, i32
  }
  func.func @transform_9(%arg0: i32) -> (i32, i32) {
    %c0_i32 = arith.constant 0 : i32
    %c0_i32_0 = arith.constant 0 : i32
    %c0_i32_1 = arith.constant 0 : i32
    return %c0_i32, %c0_i32_0 : i32, i32
  }
  func.func @transform_10(%arg0: i32) -> (i32, i32) {
    %c0_i32 = arith.constant 0 : i32
    %c0_i32_0 = arith.constant 0 : i32
    %c0_i32_1 = arith.constant 0 : i32
    return %c0_i32, %c0_i32_0 : i32, i32
  }
  func.func @transform_11(%arg0: i32) -> (i32, i32) {
    %c0_i32 = arith.constant 0 : i32
    %c0_i32_0 = arith.constant 0 : i32
    %c0_i32_1 = arith.constant 0 : i32
    return %c0_i32, %c0_i32_0 : i32, i32
  }
  func.func @transform_12(%arg0: i32) -> (i32, i32) {
    %c0_i32 = arith.constant 0 : i32
    %c0_i32_0 = arith.constant 0 : i32
    %c0_i32_1 = arith.constant 0 : i32
    return %c0_i32, %c0_i32_0 : i32, i32
  }
  func.func @transform_13(%arg0: i32) -> (i32, i32, i32, i32) {
    %c0_i32 = arith.constant 0 : i32
    %c0_i32_0 = arith.constant 0 : i32
    %c0_i32_1 = arith.constant 0 : i32
    %c0_i32_2 = arith.constant 0 : i32
    return %arg0, %c0_i32, %c0_i32_0, %c0_i32_1 : i32, i32, i32, i32
  }
}

</mosaic_0001>

<bundles_post_ra>
// kernel: model_forward.3
= control target key start
LH: loop header
LB: loop body
LE: loop exit
PB: predicated region body
PF: predicated region fallthrough
CT: control target
= control target key end

     0   :  { %s1583_s15 = smov 0   ;;  %s1758_s0 = inlined_call_operand.vmem [shape: f32[8,2,64], index: 0, kind: input, shape index: {}]   ;;  %s1759_s1 = inlined_call_operand.vmem [shape: f32[8,2,64], index: 1, kind: input, shape index: {}]   ;;  %s1760_s2 = inlined_call_operand.vmem [shape: f32[2,16,64], index: 2, kind: input, shape index: {}]   ;;  %s1761_s3 = inlined_call_operand.vmem [shape: f32[8,2,16], index: 3, kind: output, shape index: {0}]   ;;  %s1762_s4 = inlined_call_operand.vmem [shape: f32[8,2,16], index: 4, kind: output, shape index: {1}]  }
   0x1 LB: > { %s1310_s16 = sadd.s32 4294967295, %s1547_s15   ;;  %p1314_p0 = scmp.ge.s32.totalorder %s1547_s15, 1  ;;  %s1547_s15 = sphi %s1583_s15, %s15_s15  }
   0x2   : > { %p183_p1 = scmp.lt.s32.totalorder %s1547_s15, 3 }
   0x4   : > { %p184_p2 = pnand %p1314_p0, %p183_p1 }
   0x5   : > { %s1315_s17 = sshll.u32 (!%p184_p2), %s1310_s16, 2  ;;  %s227_s18 = ssub.s32 (!%p184_p2), 1, %s1310_s16 }
   0x6   : > { %187 = sbr.rel (%p184_p2) target bundleno = 2867 (0xb33), region = 32  ;;  %p222_p3 = scmp.lt.s32.totalorder (!%p184_p2), %s1315_s17, 7 }
   0x7   : > { %s1317_s19 = sshll.u32 (!%p184_p2), %s227_s18, 2  ;;  %p1323_p5 = scmp.ne.s32.totalorder (!%p184_p2), %s1310_s16, 0 }
   0x8   : > { %p229_p4 = scmp.lt.s32.totalorder (!%p184_p2), %s1317_s19, 7 }
   0xd   : > { %s1764_s17 = smov (!%p222_p3, %s1315_s17), 7  ;;  %s1766_s19 = smov (!%p229_p4, %s1317_s19), 7 }
   0xe   : > { %s1316_s20 = sshll.u32 %s1764_s17, 1  ;;  %s1318_s24 = sshll.u32 %s1766_s19, 1  ;;  %vm253_vm0 = vcmask (!%p1323_p5), 123904   ;;  %v1549_v0 = vmov (!%p1323_p5), 0.0  }
   0xf   : > { %s1594_s23 = scalar_lea.vmem %s1758_s0, %s1316_s20  ;;  %s1599_s27 = scalar_lea.vmem %s1759_s1, %s1318_s24  ;;  %254 = vst.msk [vmem:[#allocation2] sm:$0x3] (!%p1323_p5), %vm253_vm0, %v1549_v0  ;;  %255 = vst.msk [vmem:[#allocation3] sm:$0x3] (!%p1323_p5), %vm253_vm0, %v1549_v0 }
  0x10   : > { %s1604_s30 = scalar_lea.vmem %s1761_s3, %s1316_s20  ;;  %s1609_s7 = scalar_lea.vmem %s1762_s4, %s1318_s24  ;;  %256 = vst.msk [vmem:[#allocation4] sm:$0x3] (!%p1323_p5), %vm253_vm0, %v1549_v0  ;;  %257 = vst.msk [vmem:[#allocation5] sm:$0x3] (!%p1323_p5), %vm253_vm0, %v1549_v0 }
  0x11   : > { %252 = sbr.rel (%p1323_p5) target bundleno = 24 (0x18), region = 36 }
  0x18 PF: > { %v258_v1 = vld [vmem:[%s1760_s2] sm:$0xff]  ;;  %v259_v2 = vld [vmem:[%s1760_s2 + $0x8] sm:$0xff]  ;;  %v1550_v3 = vmov 0.0|0.0   ;;  %vm1551_vm1 = vmmov 0   ;;  %v1552_v5 = vmov 0.0   ;;  %v1324_v6 = vld [vmem:[%s1760_s2 + $0x10] sm:$0xff] }
  0x19   : > { %1436 = vmatprep.subr.bf16.mxu0 %v1550_v3  ;;  %v1618_v4 = vpack.c.bf16 %v259_v2, %v258_v1  ;;  %1384 = vmatprep.mubr.msk.f32.mxu0 %vm1551_vm1, %v1552_v5  ;;  %v1325_v7 = vld [vmem:[%s1760_s2 + $0x18] sm:$0xff]  ;;  %v265_v9 = vld [vmem:[#allocation3] sm:$0x3]  ;;  %v264_v10 = vld [vmem:[#allocation2] sm:$0x3]  ;;  %vm266_vm2 = vcmask 130048  }
  0x1a   : > { %1439 = vmatprep.subr.bf16.mxu1 %v1550_v3  ;;  %v1629_v8 = vpack.c.bf16 %v1325_v7, %v1324_v6  ;;  %1391 = vmatprep.mubr.msk.f32.mxu1 %vm1551_vm1, %v1552_v5  ;;  %s1553_s17 = smov 16   ;;  %v371_v11 = vld [vmem:[#allocation4] sm:$0x3]  ;;  %v372_v12 = vld [vmem:[#allocation5] sm:$0x3]  ;;  %s1554_s18 = smov 96  }
  0x1b   : > { %1438 = vmatpush3.bf16.msra.mxu0 %v1618_v4  ;;  %349 = vrot.lane.b32.xlu1 %v265_v9, %s1553_s17  ;;  %v263_v13 = vld [vmem:[%s1594_s23] sm:$0x3]  ;;  %v1328_v14 = vld [vmem:[%s1599_s27 + $0x6] sm:$0x3]  ;;  %s1555_s19 = smov 32   ;;  %s1556_s20 = smov 80  }
  0x1c   : > { %1441 = vmatpush3.bf16.msra.mxu1 %v1629_v8  ;;  %1442 = vmatprep.subr.bf16.mxu0 %v1550_v3  ;;  %s1557_s21 = smov 112   ;;  %vm479_vm3 = vcmask 123904   ;;  %v1332_v55 = vld [vmem:[%s1594_s23 + $0x2] sm:$0x3]  ;;  %v1335_v59 = vld [vmem:[%s1599_s27 + $0x4] sm:$0x3] }
  0x1d   : > { %1445 = vmatprep.subr.bf16.mxu1 %v1550_v3 }
  0x1e   : > { %1385 = vmatmul.mubr.msk.f32.vlgmr.msra.gmra.mrb[0].mxu0 %vm266_vm2, %v264_v10 }
  0x1f   : > { %1392 = vmatmul.mubr.msk.f32.vlgmr.msra.gmra.mrb[0].mxu1 %vm266_vm2, %v371_v11  ;;  %455 = vrot.lane.b32.xlu1 %v372_v12, %s1553_s17 }
  0x20   : > { %1444 = vmatpush3.bf16.msra.mxu0 %v1618_v4  ;;  %1398 = vmatprep.mubr.msk.f32.mxu0 %vm1551_vm1, %v1552_v5 }
  0x21   : > { %1447 = vmatpush3.bf16.msra.mxu1 %v1629_v8  ;;  %1405 = vmatprep.mubr.msk.f32.mxu1 %vm1551_vm1, %v1552_v5 }
  0x22   : > { %1448 = vmatprep.subr.bf16.mxu0 %v1550_v3  ;;  %1451 = vmatprep.subr.bf16.mxu1 %v1550_v3 }
  0x8d   : > { %v350_v35 = vpop.permute.xlu1 %349 }
  0x91   : > { %v456_v37 = vpop.permute.xlu1 %455 }
  0xf1   : > { %v336_v15 = vpop.f32.mrb[0].mxu0 }
  0xf2   : > { %v340_v16 = vadd.f32 %v336_v15, %v263_v13  ;;  %v1386_v17 = vpop.f32.mrb[1].mxu0  ;;  %v442_v18 = vpop.f32.mrb[0].mxu1 }
  0xf3   : > { %v446_v19 = vadd.f32 %v1328_v14, %v442_v18  ;;  %v1393_v20 = vpop.f32.mrb[1].mxu1 }
  0xf4   : > { %1477 = vtanh.f32 %v340_v16  ;;  %v1327_v23 = vmul.f32 -1.442695, %v340_v16 }
  0xf5   : > { %1479 = vtanh.f32 %v446_v19  ;;  %v1330_v24 = vmul.f32 -1.442695, %v446_v19 }
  0xf6   : > { %1481 = vpow2.f32 %v1327_v23 }
  0xf7   : > { %1483 = vpow2.f32 %v1330_v24 }
  0xfe   : > { %v1478_v21 = vpop.eup %1477 }
  0xff   : > { %354 = vrot.lane.b32.xlu0 %v1478_v21, %s1554_s18  ;;  %v1480_v22 = vpop.eup %1479 }
 0x100   : > { %v1482_v25 = vpop.eup %1481 }
 0x101   : > { %v344_v26 = vadd.f32 1.0, %v1482_v25  ;;  %v1484_v27 = vpop.eup %1483 }
 0x102   : > { %v450_v28 = vadd.f32 1.0, %v1484_v27 }
 0x103   : > { %460 = vrot.lane.b32.xlu0 %v1480_v22, %s1554_s18  ;;  %1485 = vrcp.f32 %v344_v26 }
 0x104   : > { %1487 = vrcp.f32 %v450_v28 }
 0x10d   : > { %v1486_v29 = vpop.eup %1485 }
 0x10e   : > { %v1488_v32 = vpop.eup %1487  ;;  %v352_v36 = vmul.f32 %v1486_v29, %v350_v35 }
 0x10f   : > { %v458_v40 = vmul.f32 %v1488_v32, %v456_v37 }
 0x171   : > { %v355_v30 = vpop.permute.xlu0 %354 }
 0x172   : > { %v357_v31 = vmul.f32 %v1486_v29, %v355_v30 }
 0x174   : > { %359 = vrot.lane.b32.xlu0 %v357_v31, %s1553_s17 }
 0x175   : > { %v461_v33 = vpop.permute.xlu0 %460 }
 0x176   : > { %v463_v34 = vmul.f32 %v1488_v32, %v461_v33 }
 0x178   : > { %465 = vrot.lane.b32.xlu1 %v463_v34, %s1553_s17 }
 0x1e6   : > { %v360_v38 = vpop.permute.xlu0 %359 }
 0x1e7   : > { %v362_v39 = vadd.f32 %v360_v38, %v352_v36  ;;  %v1340_v38 = vld [vmem:[%s1594_s23 + $0x4] sm:$0x3] }
 0x1e9   : > { %1489 = vtanh.f32 %v362_v39 }
 0x1ea   : > { %v466_v41 = vpop.permute.xlu1 %465 }
 0x1eb   : > { %v468_v42 = vadd.f32 %v466_v41, %v458_v40 }
 0x1ed   : > { %1491 = vtanh.f32 %v468_v42 }
 0x1f3   : > { %v1490_v43 = vpop.eup %1489 }
 0x1f4   : > { %365 = vrot.lane.b32.xlu0 %v1490_v43, %s1555_s19 }
 0x1f7   : > { %v1492_v44 = vpop.eup %1491 }
 0x1f8   : > { %471 = vrot.lane.b32.xlu1 %v1492_v44, %s1555_s19 }
 0x266   : > { %v366_v45 = vpop.permute.xlu0 %365 }
 0x267   : > { %v368_v46 = vmul.f32 %v1486_v29, %v366_v45 }
 0x269   : > { %476 = vrot.lane.b32.xlu0 %v368_v46, %s1556_s20 }
 0x26a   : > { %v472_v47 = vpop.permute.xlu1 %471 }
 0x26b   : > { %v474_v48 = vmul.f32 %v1488_v32, %v472_v47 }
 0x26d   : > { %487 = vrot.lane.b32.xlu1 %v474_v48, %s1556_s20  ;;  %482 = vrot.lane.b32.xlu0 %v362_v39, %s1557_s21 }
 0x271   : > { %492 = vrot.lane.b32.xlu1 %v468_v42, %s1557_s21  ;;  %v1343_v42 = vld [vmem:[%s1599_s27 + $0x2] sm:$0x3] }
 0x2db   : > { %v477_v49 = vpop.permute.xlu0 %476 }
 0x2dc   : > { %480 = vst.msk [vmem:[#allocation2] sm:$0x3] %vm479_vm3, %v477_v49  ;;  %496 = vst.msk [vmem:[%s1604_s30] sm:$0x3] %vm479_vm3, %v477_v49 }
 0x2df   : > { %v488_v50 = vpop.permute.xlu1 %487  ;;  %v483_v51 = vpop.permute.xlu0 %482 }
 0x2e0   : > { %490 = vst.msk [vmem:[#allocation4] sm:$0x3] %vm479_vm3, %v488_v50  ;;  %1331 = vst.msk [vmem:[%s1609_s7 + $0x6] sm:$0x3] %vm479_vm3, %v488_v50 }
 0x2e1   : > { %485 = vst.msk [vmem:[#allocation3] sm:$0x3] %vm479_vm3, %v483_v51 }
 0x2e3   : > { %v493_v52 = vpop.permute.xlu1 %492  ;;  %v501_v53 = vld [vmem:[#allocation2] sm:$0x3] }
 0x2e4   : > { %495 = vst.msk [vmem:[#allocation5] sm:$0x3] %vm479_vm3, %v493_v52  ;;  %1399 = vmatmul.mubr.msk.f32.vlgmr.msra.gmra.mrb[2].mxu0 %vm266_vm2, %v501_v53 }
 0x2e5   : > { %1450 = vmatpush3.bf16.msra.mxu0 %v1618_v4  ;;  %1412 = vmatprep.mubr.msk.f32.mxu0 %vm1551_vm1, %v1552_v5 }
 0x2e6   : > { %1454 = vmatprep.subr.bf16.mxu0 %v1550_v3 }
 0x2e7   : > { %v607_v54 = vld [vmem:[#allocation4] sm:$0x3] }
 0x2e8   : > { %1406 = vmatmul.mubr.msk.f32.vlgmr.msra.gmra.mrb[2].mxu1 %vm266_vm2, %v607_v54  ;;  %v502_v1 = vld [vmem:[#allocation3] sm:$0x3] }
 0x2e9   : > { %1453 = vmatpush3.bf16.msra.mxu1 %v1629_v8  ;;  %1419 = vmatprep.mubr.msk.f32.mxu1 %vm1551_vm1, %v1552_v5 }
 0x2ea   : > { %1457 = vmatprep.subr.bf16.mxu1 %v1550_v3 }
 0x2eb   : > { %v608_v2 = vld [vmem:[#allocation5] sm:$0x3] }
 0x3b7   : > { %v572_v56 = vpop.f32.mrb[2].mxu0 }
 0x3b8   : > { %v576_v57 = vadd.f32 %v1332_v55, %v572_v56  ;;  %v1400_v58 = vpop.f32.mrb[3].mxu0 }
 0x3ba   : > { %1493 = vtanh.f32 %v576_v57  ;;  %v1334_v3 = vmul.f32 -1.442695, %v576_v57 }
 0x3bb   : > { %v678_v60 = vpop.f32.mrb[2].mxu1 }
 0x3bc   : > { %v682_v61 = vadd.f32 %v1335_v59, %v678_v60  ;;  %v1407_v62 = vpop.f32.mrb[3].mxu1 }
 0x3be   : > { %1495 = vtanh.f32 %v682_v61  ;;  %v1337_v6 = vmul.f32 -1.442695, %v682_v61 }
 0x3bf   : > { %1497 = vpow2.f32 %v1334_v3 }
 0x3c0   : > { %1499 = vpow2.f32 %v1337_v6 }
 0x3c4   : > { %v1494_v63 = vpop.eup %1493 }
 0x3c5   : > { %590 = vrot.lane.b32.xlu0 %v1494_v63, %s1554_s18 }
 0x3c8   : > { %v1496_v0 = vpop.eup %1495 }
 0x3c9   : > { %696 = vrot.lane.b32.xlu1 %v1496_v0, %s1554_s18  ;;  %585 = vrot.lane.b32.xlu0 %v502_v1, %s1553_s17  ;;  %v1498_v7 = vpop.eup %1497 }
 0x3ca   : > { %v580_v9 = vadd.f32 1.0, %v1498_v7  ;;  %v1500_v10 = vpop.eup %1499 }
 0x3cb   : > { %v686_v11 = vadd.f32 1.0, %v1500_v10 }
 0x3cc   : > { %1501 = vrcp.f32 %v580_v9 }
 0x3cd   : > { %691 = vrot.lane.b32.xlu1 %v608_v2, %s1553_s17  ;;  %1503 = vrcp.f32 %v686_v11 }
 0x3d6   : > { %v1502_v12 = vpop.eup %1501 }
 0x3d7   : > { %v1504_v15 = vpop.eup %1503 }
 0x437   : > { %v591_v13 = vpop.permute.xlu0 %590 }
 0x438   : > { %v593_v14 = vmul.f32 %v1502_v12, %v591_v13 }
 0x43a   : > { %595 = vrot.lane.b32.xlu0 %v593_v14, %s1553_s17 }
 0x43b   : > { %v697_v16 = vpop.permute.xlu1 %696  ;;  %v586_v18 = vpop.permute.xlu0 %585 }
 0x43c   : > { %v699_v17 = vmul.f32 %v1504_v15, %v697_v16  ;;  %v588_v19 = vmul.f32 %v1502_v12, %v586_v18  ;;  %v1348_v18 = vld [vmem:[%s1594_s23 + $0x6] sm:$0x3] }
 0x43e   : > { %701 = vrot.lane.b32.xlu1 %v699_v17, %s1553_s17 }
 0x43f   : > { %v692_v20 = vpop.permute.xlu1 %691 }
 0x440   : > { %v694_v23 = vmul.f32 %v1504_v15, %v692_v20 }
 0x4ac   : > { %v596_v21 = vpop.permute.xlu0 %595 }
 0x4ad   : > { %v598_v22 = vadd.f32 %v596_v21, %v588_v19 }
 0x4af   : > { %1505 = vtanh.f32 %v598_v22 }
 0x4b0   : > { %v702_v24 = vpop.permute.xlu1 %701 }
 0x4b1   : > { %v704_v25 = vadd.f32 %v702_v24, %v694_v23 }
 0x4b3   : > { %1507 = vtanh.f32 %v704_v25 }
 0x4b9   : > { %v1506_v26 = vpop.eup %1505 }
 0x4ba   : > { %601 = vrot.lane.b32.xlu0 %v1506_v26, %s1555_s19 }
 0x4bd   : > { %v1508_v27 = vpop.eup %1507 }
 0x4be   : > { %707 = vrot.lane.b32.xlu1 %v1508_v27, %s1555_s19 }
 0x52c   : > { %v602_v28 = vpop.permute.xlu0 %601 }
 0x52d   : > { %v604_v29 = vmul.f32 %v1502_v12, %v602_v28 }
 0x52f   : > { %712 = vrot.lane.b32.xlu0 %v604_v29, %s1556_s20 }
 0x530   : > { %v708_v30 = vpop.permute.xlu1 %707 }
 0x531   : > { %v710_v31 = vmul.f32 %v1504_v15, %v708_v30 }
 0x533   : > { %722 = vrot.lane.b32.xlu1 %v710_v31, %s1556_s20  ;;  %717 = vrot.lane.b32.xlu0 %v598_v22, %s1557_s21  ;;  %v1077_v22 = vld [vmem:[%s1599_s27] sm:$0x3] }
 0x537   : > { %727 = vrot.lane.b32.xlu1 %v704_v25, %s1557_s21 }
 0x5a1   : > { %v713_v32 = vpop.permute.xlu0 %712 }
 0x5a2   : > { %715 = vst.msk [vmem:[#allocation2] sm:$0x3] %vm479_vm3, %v713_v32  ;;  %1338 = vst.msk [vmem:[%s1604_s30 + $0x2] sm:$0x3] %vm479_vm3, %v713_v32 }
 0x5a5   : > { %v723_v33 = vpop.permute.xlu1 %722  ;;  %v718_v34 = vpop.permute.xlu0 %717 }
 0x5a6   : > { %725 = vst.msk [vmem:[#allocation4] sm:$0x3] %vm479_vm3, %v723_v33  ;;  %1339 = vst.msk [vmem:[%s1609_s7 + $0x4] sm:$0x3] %vm479_vm3, %v723_v33 }
 0x5a7   : > { %720 = vst.msk [vmem:[#allocation3] sm:$0x3] %vm479_vm3, %v718_v34 }
 0x5a9   : > { %v728_v35 = vpop.permute.xlu1 %727  ;;  %v737_v36 = vld [vmem:[#allocation2] sm:$0x3] }
 0x5aa   : > { %730 = vst.msk [vmem:[#allocation5] sm:$0x3] %vm479_vm3, %v728_v35  ;;  %1413 = vmatmul.mubr.msk.f32.vlgmr.msra.gmra.mrb[4].mxu0 %vm266_vm2, %v737_v36 }
 0x5ab   : > { %1456 = vmatpush3.bf16.msra.mxu0 %v1618_v4  ;;  %1426 = vmatprep.mubr.msk.f32.mxu0 %vm1551_vm1, %v1552_v5 }
 0x5ad   : > { %v843_v37 = vld [vmem:[#allocation4] sm:$0x3] }
 0x5ae   : > { %1420 = vmatmul.mubr.msk.f32.vlgmr.msra.gmra.mrb[4].mxu1 %vm266_vm2, %v843_v37  ;;  %v738_v47 = vld [vmem:[#allocation3] sm:$0x3] }
 0x5af   : > { %1459 = vmatpush3.bf16.msra.mxu1 %v1629_v8  ;;  %1433 = vmatprep.mubr.msk.f32.mxu1 %vm1551_vm1, %v1552_v5 }
 0x5b1   : > { %v844_v5 = vld [vmem:[#allocation5] sm:$0x3] }
 0x67d   : > { %v808_v39 = vpop.f32.mrb[4].mxu0 }
 0x67e   : > { %v812_v40 = vadd.f32 %v1340_v38, %v808_v39  ;;  %v1414_v41 = vpop.f32.mrb[5].mxu0 }
 0x680   : > { %1509 = vtanh.f32 %v812_v40  ;;  %v1342_v8 = vmul.f32 -1.442695, %v812_v40 }
 0x681   : > { %v914_v43 = vpop.f32.mrb[4].mxu1 }
 0x682   : > { %v918_v44 = vadd.f32 %v1343_v42, %v914_v43  ;;  %v1421_v4 = vpop.f32.mrb[5].mxu1 }
 0x684   : > { %1511 = vtanh.f32 %v918_v44  ;;  %v1345_v48 = vmul.f32 -1.442695, %v918_v44 }
 0x685   : > { %1513 = vpow2.f32 %v1342_v8 }
 0x686   : > { %1515 = vpow2.f32 %v1345_v48 }
 0x68a   : > { %v1510_v45 = vpop.eup %1509 }
 0x68b   : > { %826 = vrot.lane.b32.xlu0 %v1510_v45, %s1554_s18 }
 0x68e   : > { %v1512_v46 = vpop.eup %1511 }
 0x68f   : > { %932 = vrot.lane.b32.xlu1 %v1512_v46, %s1554_s18  ;;  %821 = vrot.lane.b32.xlu0 %v738_v47, %s1553_s17  ;;  %v1514_v49 = vpop.eup %1513 }
 0x690   : > { %v816_v50 = vadd.f32 1.0, %v1514_v49  ;;  %v1516_v51 = vpop.eup %1515 }
 0x691   : > { %v922_v52 = vadd.f32 1.0, %v1516_v51 }
 0x692   : > { %1517 = vrcp.f32 %v816_v50 }
 0x693   : > { %927 = vrot.lane.b32.xlu1 %v844_v5, %s1553_s17  ;;  %1519 = vrcp.f32 %v922_v52 }
 0x69c   : > { %v1518_v53 = vpop.eup %1517 }
 0x69d   : > { %v1520_v56 = vpop.eup %1519 }
 0x6fd   : > { %v827_v54 = vpop.permute.xlu0 %826 }
 0x6fe   : > { %v829_v55 = vmul.f32 %v1518_v53, %v827_v54 }
 0x700   : > { %831 = vrot.lane.b32.xlu0 %v829_v55, %s1553_s17 }
 0x701   : > { %v933_v57 = vpop.permute.xlu1 %932  ;;  %v822_v59 = vpop.permute.xlu0 %821 }
 0x702   : > { %v935_v58 = vmul.f32 %v1520_v56, %v933_v57  ;;  %v824_v60 = vmul.f32 %v1518_v53, %v822_v59 }
 0x704   : > { %937 = vrot.lane.b32.xlu1 %v935_v58, %s1553_s17 }
 0x705   : > { %v928_v61 = vpop.permute.xlu1 %927 }
 0x706   : > { %v930_v0 = vmul.f32 %v1520_v56, %v928_v61 }
 0x772   : > { %v832_v62 = vpop.permute.xlu0 %831 }
 0x773   : > { %v834_v63 = vadd.f32 %v832_v62, %v824_v60 }
 0x775   : > { %1521 = vtanh.f32 %v834_v63 }
 0x776   : > { %v938_v1 = vpop.permute.xlu1 %937 }
 0x777   : > { %v940_v2 = vadd.f32 %v938_v1, %v930_v0 }
 0x779   : > { %1523 = vtanh.f32 %v940_v2 }
 0x77f   : > { %v1522_v3 = vpop.eup %1521 }
 0x780   : > { %837 = vrot.lane.b32.xlu0 %v1522_v3, %s1555_s19 }
 0x783   : > { %v1524_v6 = vpop.eup %1523 }
 0x784   : > { %943 = vrot.lane.b32.xlu1 %v1524_v6, %s1555_s19 }
 0x7f2   : > { %v838_v7 = vpop.permute.xlu0 %837 }
 0x7f3   : > { %v840_v9 = vmul.f32 %v1518_v53, %v838_v7 }
 0x7f5   : > { %948 = vrot.lane.b32.xlu0 %v840_v9, %s1556_s20 }
 0x7f6   : > { %v944_v10 = vpop.permute.xlu1 %943 }
 0x7f7   : > { %v946_v11 = vmul.f32 %v1520_v56, %v944_v10 }
 0x7f9   : > { %958 = vrot.lane.b32.xlu1 %v946_v11, %s1556_s20  ;;  %953 = vrot.lane.b32.xlu0 %v834_v63, %s1557_s21 }
 0x7fd   : > { %963 = vrot.lane.b32.xlu1 %v940_v2, %s1557_s21 }
 0x867   : > { %v949_v12 = vpop.permute.xlu0 %948 }
 0x868   : > { %951 = vst.msk [vmem:[#allocation2] sm:$0x3] %vm479_vm3, %v949_v12  ;;  %1346 = vst.msk [vmem:[%s1604_s30 + $0x4] sm:$0x3] %vm479_vm3, %v949_v12 }
 0x86b   : > { %v959_v13 = vpop.permute.xlu1 %958  ;;  %v954_v14 = vpop.permute.xlu0 %953 }
 0x86c   : > { %961 = vst.msk [vmem:[#allocation4] sm:$0x3] %vm479_vm3, %v959_v13  ;;  %1347 = vst.msk [vmem:[%s1609_s7 + $0x2] sm:$0x3] %vm479_vm3, %v959_v13 }
 0x86d   : > { %956 = vst.msk [vmem:[#allocation3] sm:$0x3] %vm479_vm3, %v954_v14 }
 0x86f   : > { %v964_v15 = vpop.permute.xlu1 %963  ;;  %v973_v16 = vld [vmem:[#allocation2] sm:$0x3] }
 0x870   : > { %966 = vst.msk [vmem:[#allocation5] sm:$0x3] %vm479_vm3, %v964_v15  ;;  %1427 = vmatmul.mubr.msk.f32.vlgmr.msra.gmra.mrb[6].mxu0 %vm266_vm2, %v973_v16 }
 0x873   : > { %v1078_v17 = vld [vmem:[#allocation4] sm:$0x3] }
 0x874   : > { %1434 = vmatmul.mubr.msk.f32.vlgmr.msra.gmra.mrb[6].mxu1 %vm266_vm2, %v1078_v17  ;;  %v974_v28 = vld [vmem:[#allocation3] sm:$0x3] }
 0x877   : > { %v1079_v29 = vld [vmem:[#allocation5] sm:$0x3] }
 0x943   : > { %v1044_v19 = vpop.f32.mrb[6].mxu0 }
 0x944   : > { %v1048_v20 = vadd.f32 %v1348_v18, %v1044_v19  ;;  %v1428_v21 = vpop.f32.mrb[7].mxu0 }
 0x946   : > { %1525 = vtanh.f32 %v1048_v20  ;;  %v1350_v30 = vmul.f32 -1.442695, %v1048_v20 }
 0x947   : > { %v1149_v23 = vpop.f32.mrb[6].mxu1 }
 0x948   : > { %v1153_v24 = vadd.f32 %v1149_v23, %v1077_v22  ;;  %v1435_v25 = vpop.f32.mrb[7].mxu1 }
 0x94a   : > { %1527 = vtanh.f32 %v1153_v24  ;;  %v1352_v31 = vmul.f32 -1.442695, %v1153_v24 }
 0x94b   : > { %1529 = vpow2.f32 %v1350_v30 }
 0x94c   : > { %1531 = vpow2.f32 %v1352_v31 }
 0x950   : > { %v1526_v26 = vpop.eup %1525 }
 0x951   : > { %1062 = vrot.lane.b32.xlu0 %v1526_v26, %s1554_s18 }
 0x954   : > { %v1528_v27 = vpop.eup %1527 }
 0x955   : > { %1167 = vrot.lane.b32.xlu1 %v1528_v27, %s1554_s18  ;;  %1057 = vrot.lane.b32.xlu0 %v974_v28, %s1553_s17  ;;  %v1530_v32 = vpop.eup %1529 }
 0x956   : > { %v1052_v33 = vadd.f32 1.0, %v1530_v32  ;;  %v1532_v34 = vpop.eup %1531 }
 0x957   : > { %v1157_v35 = vadd.f32 1.0, %v1532_v34 }
 0x958   : > { %1533 = vrcp.f32 %v1052_v33 }
 0x959   : > { %1162 = vrot.lane.b32.xlu1 %v1079_v29, %s1553_s17  ;;  %1535 = vrcp.f32 %v1157_v35 }
 0x962   : > { %v1534_v36 = vpop.eup %1533 }
 0x963   : > { %v1536_v39 = vpop.eup %1535 }
 0x9c3   : > { %v1063_v37 = vpop.permute.xlu0 %1062 }
 0x9c4   : > { %v1065_v38 = vmul.f32 %v1534_v36, %v1063_v37 }
 0x9c6   : > { %1067 = vrot.lane.b32.xlu0 %v1065_v38, %s1553_s17 }
 0x9c7   : > { %v1168_v40 = vpop.permute.xlu1 %1167  ;;  %v1058_v42 = vpop.permute.xlu0 %1057 }
 0x9c8   : > { %v1170_v41 = vmul.f32 %v1536_v39, %v1168_v40  ;;  %v1060_v43 = vmul.f32 %v1534_v36, %v1058_v42 }
 0x9ca   : > { %1172 = vrot.lane.b32.xlu1 %v1170_v41, %s1553_s17 }
 0x9cb   : > { %v1163_v44 = vpop.permute.xlu1 %1162 }
 0x9cc   : > { %v1165_v46 = vmul.f32 %v1536_v39, %v1163_v44 }
 0xa38   : > { %v1068_v4 = vpop.permute.xlu0 %1067 }
 0xa39   : > { %v1070_v45 = vadd.f32 %v1068_v4, %v1060_v43 }
 0xa3b   : > { %1537 = vtanh.f32 %v1070_v45 }
 0xa3c   : > { %v1173_v47 = vpop.permute.xlu1 %1172 }
 0xa3d   : > { %v1175_v5 = vadd.f32 %v1173_v47, %v1165_v46 }
 0xa3f   : > { %1539 = vtanh.f32 %v1175_v5 }
 0xa45   : > { %v1538_v8 = vpop.eup %1537 }
 0xa46   : > { %1073 = vrot.lane.b32.xlu0 %v1538_v8, %s1555_s19 }
 0xa49   : > { %v1540_v48 = vpop.eup %1539 }
 0xa4a   : > { %1178 = vrot.lane.b32.xlu1 %v1540_v48, %s1555_s19 }
 0xa4e   : > { %1188 = vrot.lane.b32.xlu1 %v1070_v45, %s1557_s21 }
 0xa52   : > { %1198 = vrot.lane.b32.xlu1 %v1175_v5, %s1557_s21 }
 0xab8   : > { %v1074_v49 = vpop.permute.xlu0 %1073 }
 0xab9   : > { %v1076_v50 = vmul.f32 %v1534_v36, %v1074_v49 }
 0xabb   : > { %1183 = vrot.lane.b32.xlu0 %v1076_v50, %s1556_s20 }
 0xabc   : > { %v1179_v51 = vpop.permute.xlu1 %1178 }
 0xabd   : > { %v1181_v52 = vmul.f32 %v1536_v39, %v1179_v51 }
 0xabf   : > { %1193 = vrot.lane.b32.xlu0 %v1181_v52, %s1556_s20 }
 0xac0   : > { %v1189_v53 = vpop.permute.xlu1 %1188 }
 0xac1   : > { %1191 = vst.msk [vmem:[#allocation3] sm:$0x3] %vm479_vm3, %v1189_v53 }
 0xac4   : > { %v1199_v54 = vpop.permute.xlu1 %1198 }
 0xac5   : > { %1201 = vst.msk [vmem:[#allocation5] sm:$0x3] %vm479_vm3, %v1199_v54 }
 0xb2d   : > { %v1184_v55 = vpop.permute.xlu0 %1183 }
 0xb2e   : > { %1186 = vst.msk [vmem:[#allocation2] sm:$0x3] %vm479_vm3, %v1184_v55  ;;  %1353 = vst.msk [vmem:[%s1604_s30 + $0x6] sm:$0x3] %vm479_vm3, %v1184_v55 }
 0xb31   : > { %v1194_v56 = vpop.permute.xlu0 %1193 }
 0xb32   : > { %1196 = vst.msk [vmem:[#allocation4] sm:$0x3] %vm479_vm3, %v1194_v56  ;;  %1204 = vst.msk [vmem:[%s1609_s7] sm:$0x3] %vm479_vm3, %v1194_v56 }
 0xb33 PF: > { %s15_s15 = sadd.s32 1, %s1547_s15  }
 0xb34   : > { %p12_p6 = scmp.ge.s32.totalorder %s15_s15, 4  }
 0xb36   :  { %14 = sbr.rel (!%p12_p6) target bundleno = 1 (0x1), region = 94 }

// kernel: model_forward.5
= control target key start
LH: loop header
LB: loop body
LE: loop exit
PB: predicated region body
PF: predicated region fallthrough
CT: control target
= control target key end

     0   :  { %s2151_s0 = inlined_call_operand.vmem [shape: f32[2,8,16], index: 0, kind: input, shape index: {}]   ;;  %s2152_s1 = inlined_call_operand.vmem [shape: f32[2,8,16], index: 1, kind: input, shape index: {}]   ;;  %s2153_s2 = inlined_call_operand.vmem [shape: f32[16,128], index: 2, kind: input, shape index: {}]   ;;  %s2154_s3 = inlined_call_operand.vmem [shape: f32[16,128], index: 3, kind: input, shape index: {}]   ;;  %s2155_s4 = inlined_call_operand.vmem [shape: f32[1,128], index: 4, kind: input, shape index: {}]   ;;  %s2156_s5 = inlined_call_operand.vmem [shape: f32[64,32], index: 5, kind: input, shape index: {}]   ;;  %s2157_s6 = inlined_call_operand.vmem [shape: f32[1,32], index: 6, kind: input, shape index: {}]   ;;  %s2158_s7 = inlined_call_operand.vmem [shape: f32[64,32], index: 7, kind: input, shape index: {}]   ;;  %s2159_s8 = inlined_call_operand.vmem [shape: f32[1,32], index: 8, kind: input, shape index: {}]   ;;  %s2160_s9 = inlined_call_operand.vmem [shape: f32[32,160], index: 9, kind: input, shape index: {}]   ;;  %s2161_s10 = inlined_call_operand.vmem [shape: f32[1,160], index: 10, kind: input, shape index: {}]   ;;  %s2162_s11 = inlined_call_operand.vmem [shape: f32[32,5], index: 11, kind: input, shape index: {}]   ;;  %s2163_s12 = inlined_call_operand.vmem [shape: f32[1,5], index: 12, kind: input, shape index: {}]   ;;  %s2164_s13 = inlined_call_operand.hbm [shape: f32[2,5,8,8], index: 13, kind: output, shape index: {}]  }
   0x1   :  { %2166 = sst [smem:[#allocation7_spill]] %s2153_s2 }
   0x2   :  { %2167 = sst [smem:[#allocation8_spill]] %s2154_s3 }
   0x3   :  { %18 = vsyncpa [#allocation3], 0 }
   0x4   :  { %20 = vsyncpa [#allocation3 + $0x1], 0  ;;  %s1871_s25 = smov 0   ;;  %s1873_s26 = smov 0  }
   0x5   :  { %s1875_s27 = smov 0   ;;  %s1877_s28 = smov 0  }
   0x6 LB: > { %2168 = sst [smem:[#allocation5_spill]] %s1781_s27  ;;  %s1892_s29 = sadd.s32 4294967295, %s1785_s28   ;;  %s1785_s28 = sphi %s1877_s28, %s2178_s28   ;;  %s1781_s27 = sphi %s1875_s27, %s2175_s27   ;;  %s1777_s26 = sphi %s1873_s26, %s2177_s26   ;;  %s1773_s25 = sphi %s1871_s25, %s2176_s25  }
   0x7   : > { %s1459_s30 = sadd.s32 4294967294, %s1785_s28   ;;  %s1896_s14 = sadd.s32 1, %s1785_s28  }
   0x8   : > { %s316_s15 = sadd.s32 1, %s1781_s27  ;;  %s313_s16 = ssub.s32 %s1785_s28, %s1896_s14 }
   0x9   : > { %p326_p0 = scmp.ne.s32.totalorder %s1781_s27, %s1777_s26  ;;  %p314_p1 = scmp.eq.s32.totalorder %s313_s16, 0 }
   0xa   : > { %p327_p2 = scmp.eq.s32.totalorder %s1892_s29, 1  ;;  %p332_p3 = scmp.ne.s32.totalorder %s1777_s26, %s1773_s25 }
   0xb   : > { %p333_p4 = scmp.eq.s32.totalorder %s1459_s30, 1  ;;  %p1462_p7 = scmp.ge.s32.totalorder %s1785_s28, 1 }
   0xc   : > { %s1907_s17 = scalar_select %p314_p1, %s1781_s27, %s316_s15  }
   0xd   : > { %p1909_p5 = por %p327_p2, %p326_p0  ;;  %p1913_p6 = por %p333_p4, %p332_p3 }
   0xe   : > { %2169 = sst [smem:[#allocation6_spill]] %s1907_s17  ;;  %p398_p8 = scmp.lt.s32.totalorder %s1785_s28, 3 }
  0x10   : > { %p399_p9 = pnand %p1462_p7, %p398_p8 }
  0x11   : > { %s2172_s3 = sld [smem:[#allocation8_spill]] (!%p399_p9)  ;;  %s2173_s2 = sld [smem:[#allocation7_spill]] (!%p399_p9)  ;;  %v1787_v3 = vmov (!%p399_p9), 0.0|0.0   ;;  %vm1788_vm0 = vmmov (!%p399_p9), 0   ;;  %v1789_v7 = vmov (!%p399_p9), 0.0   ;;  %v615_v8 = vld [vmem:[%s2156_s5] sm:$0xff] (!%p399_p9) }
  0x12   : > { %402 = sbr.rel (%p399_p9) target bundleno = 1025 (0x401), region = 72  ;;  %1619 = vmatprep.subr.bf16.mxu0 (!%p399_p9), %v1787_v3  ;;  %1622 = vmatprep.subr.bf16.mxu1 (!%p399_p9), %v1787_v3  ;;  %p445_p10 = scmp.lt.s32.totalorder (!%p399_p9), %s1892_s29, 1  ;;  %v616_v9 = vld [vmem:[%s2156_s5 + $0x8] sm:$0xff] (!%p399_p9)  ;;  %vm459_vm1 = vcmask (!%p399_p9), 130048   ;;  %v617_v11 = vld [vmem:[%s2156_s5 + $0x10] sm:$0xff] (!%p399_p9)  ;;  %v618_v12 = vld [vmem:[%s2156_s5 + $0x18] sm:$0xff] (!%p399_p9) }
  0x13   : > { %1535 = vmatprep.mubr.msk.f32.mxu0 (!%p399_p9), %vm1788_vm0, %v1789_v7  ;;  %1542 = vmatprep.mubr.msk.f32.mxu1 (!%p399_p9), %vm1788_vm0, %v1789_v7  ;;  %v1626_v10 = vpack.c.bf16 (!%p399_p9), %v616_v9, %v615_v8  ;;  %v1629_v15 = vpack.c.bf16 (!%p399_p9), %v618_v12, %v617_v11  ;;  %v619_v16 = vld [vmem:[%s2156_s5 + $0x20] sm:$0xff] (!%p399_p9)  ;;  %v620_v17 = vld [vmem:[%s2156_s5 + $0x28] sm:$0xff] (!%p399_p9)  ;;  %v621_v19 = vld [vmem:[%s2156_s5 + $0x30] sm:$0xff] (!%p399_p9)  ;;  %vm630_vm2 = vcmask (!%p399_p9), 523264   ;;  %vm813_vm3 = vcmask (!%p399_p9), 261120   ;;  %s1794_s27 = smov (!%p399_p9), 32  }
  0x14   : > { %v1632_v18 = vpack.c.bf16 (!%p399_p9), %v620_v17, %v619_v16  ;;  %v622_v20 = vld [vmem:[%s2156_s5 + $0x38] sm:$0xff] (!%p399_p9)  ;;  %v704_v22 = vld [vmem:[%s2158_s7] sm:$0xff] (!%p399_p9)  ;;  %v705_v23 = vld [vmem:[%s2158_s7 + $0x8] sm:$0xff] (!%p399_p9)  ;;  %v803_v8 = vlaneseq (!%p399_p9)  ;;  %vm1050_vm4 = vcmask (!%p399_p9), 64512   ;;  %s1664_s15 = smul.u32 (!%p399_p9), 640, %s1892_s29  ;;  %s1798_s23 = smov (!%p399_p9), [#allocation2]  }
  0x15   : > { %v1635_v21 = vpack.c.bf16 (!%p399_p9), %v622_v20, %v621_v19  ;;  %v706_v24 = vld [vmem:[%s2158_s7 + $0x10] sm:$0xff] (!%p399_p9)  ;;  %v1638_v25 = vpack.c.bf16 (!%p399_p9), %v705_v23, %v704_v22  ;;  %v707_v26 = vld [vmem:[%s2158_s7 + $0x18] sm:$0xff] (!%p399_p9)  ;;  %v708_v28 = vld [vmem:[%s2158_s7 + $0x20] sm:$0xff] (!%p399_p9)  ;;  %v1795_v20 = vmov (!%p399_p9), 3   ;;  %v1797_v22 = vmov (!%p399_p9), 4  }
  0x16   : > { %v1641_v27 = vpack.c.bf16 (!%p399_p9), %v707_v26, %v706_v24  ;;  %v709_v29 = vld [vmem:[%s2158_s7 + $0x28] sm:$0xff] (!%p399_p9)  ;;  %v710_v31 = vld [vmem:[%s2158_s7 + $0x30] sm:$0xff] (!%p399_p9)  ;;  %v711_v32 = vld [vmem:[%s2158_s7 + $0x38] sm:$0xff] (!%p399_p9)  ;;  %v804_v9 = vshrl.u32 (!%p399_p9), %v803_v8, 7  ;;  %s2104_s20 = scalar_lea.hbm (!%p399_p9), %s2164_s13, %s1664_s15 }
  0x17   : > { %v457_v0 = vld [vmem:[%s2172_s3] sm:$0xff] (!%p399_p9)  ;;  %v458_v1 = vld [vmem:[%s2172_s3 + $0x8] sm:$0xff] (!%p399_p9)  ;;  %v1644_v30 = vpack.c.bf16 (!%p399_p9), %v709_v29, %v708_v28  ;;  %v1647_v33 = vpack.c.bf16 (!%p399_p9), %v711_v32, %v710_v31  ;;  %v796_v35 = vld [vmem:[%s2160_s9 + $0x18] sm:$0xff] (!%p399_p9) }
  0x18   : > { %v455_v2 = vld [vmem:[%s2173_s2] sm:$0xff] (!%p399_p9)  ;;  %v1620_v4 = vpack.c.bf16 (!%p399_p9), %v458_v1, %v457_v0  ;;  %v456_v5 = vld [vmem:[%s2173_s2 + $0x8] sm:$0xff] (!%p399_p9)  ;;  %v795_v44 = vld [vmem:[%s2160_s9 + $0x10] sm:$0xff] (!%p399_p9)  ;;  %v1791_v1 = vmov (!%p399_p9), 0   ;;  %v809_v23 = vsub.s32 (!%p399_p9), 1, %v804_v9 }
  0x19   : > { %v1623_v6 = vpack.c.bf16 %v456_v5, %v455_v2  ;;  %s446_s24 = scalar_select %p445_p10, %s1892_s29, 1  ;;  %v794_v34 = vld [vmem:[%s2160_s9 + $0x8] sm:$0xff]  ;;  %v1467_v39 = vld [vmem:[%s2155_s4] ss:$0 sm:$0xff]  ;;  %v800_v46 = vld [vmem:[%s2160_s9 + $0x38] sm:$0xff]  ;;  %1717 = vset.pattern.permute.xlu0 %v1791_v1  ;;  %v1792_v2 = vmov 1  }
  0x1a   : > { %1621 = vmatpush3.bf16.msra.mxu0 %v1620_v4  ;;  %v1649_v36 = vpack.c.bf16 %v796_v35, %v794_v34  ;;  %v793_v43 = vld [vmem:[%s2160_s9] sm:$0xff]  ;;  %v798_v45 = vld [vmem:[%s2160_s9 + $0x28] sm:$0xff]  ;;  %v799_v52 = vld [vmem:[%s2160_s9 + $0x30] sm:$0xff]  ;;  %1718 = vset.pattern.permute.xlu1 %v1792_v2 }
  0x1b   : > { %1624 = vmatpush3.bf16.msra.mxu1 %v1623_v6  ;;  %1625 = vmatprep.subr.bf16.mxu0 %v1787_v3  ;;  %s1463_s30 = sshll.u32 %s446_s24, 3  ;;  %v1651_v48 = vpack.c.bf16 %v795_v44, %v793_v43  ;;  %v1653_v50 = vpack.c.bf16 %v800_v46, %v798_v45  ;;  %v797_v51 = vld [vmem:[%s2160_s9 + $0x20] sm:$0xff]  ;;  %v889_v55 = vld [vmem:[%s2162_s11 + $0x8] sm:$0xff]  ;;  %v890_v57 = vld [vmem:[%s2162_s11 + $0x10] sm:$0xff]  ;;  %s1793_s24 = smov 96  }
  0x1c   : > { %1637 = vmatprep.subr.bf16.mxu1 %v1787_v3  ;;  %s452_s2 = scalar_lea.vmem %s2152_s1, %s1463_s30  ;;  %s448_s3 = scalar_lea.vmem %s2151_s0, %s1463_s30  ;;  %v1655_v53 = vpack.c.bf16 %v799_v52, %v797_v51  ;;  %v888_v54 = vld [vmem:[%s2162_s11] sm:$0xff]  ;;  %v891_v58 = vld [vmem:[%s2162_s11 + $0x18] sm:$0xff] }
  0x1d   : > { %v454_v13 = vld [vmem:[%s452_s2] sm:$0xff]  ;;  %s1790_s2 = smov 64   ;;  %v1658_v56 = vpack.c.bf16 %v889_v55, %v888_v54  ;;  %v1661_v60 = vpack.c.bf16 %v891_v58, %v890_v57 }
  0x1e   : > { %v453_v14 = vld [vmem:[%s448_s3] sm:$0xff]  ;;  %1536 = vmatmul.mubr.msk.f32.vlgmr.msra.gmra.mrb[0].mxu0 %vm459_vm1, %v454_v13 }
  0x1f   : > { %1543 = vmatmul.mubr.msk.f32.vlgmr.msra.gmra.mrb[0].mxu1 %vm459_vm1, %v453_v14  ;;  %1627 = vmatpush3.bf16.msra.mxu0 %v1626_v10  ;;  %v1468_v61 = vld [vmem:[%s2157_s6] ss:$0 sm:$0xff]  ;;  %v805_v10 = vsub.s32 0, %v804_v9 }
  0x20   : > { %1561 = vmatprep.mubr.msk.f32.mxu0 %vm1788_vm0, %v1789_v7  ;;  %1628 = vmatprep.subr.bf16.mxu0 %v1787_v3  ;;  %v801_v11 = vld [vmem:[%s2161_s10] sm:$0x3] }
  0x21   : > { %1580 = vmatprep.mubr.msk.f32.mxu1 %vm1788_vm0, %v1789_v7  ;;  %1639 = vmatpush3.bf16.msra.mxu1 %v1638_v25  ;;  %v806_v12 = vrot.slane %v801_v11, %v805_v10  ;;  %v810_v24 = vrot.slane %v801_v11, %v809_v23 }
  0x22   : > { %1640 = vmatprep.subr.bf16.mxu1 %v1787_v3 }
  0x23   : > { %1630 = vmatpush3.bf16.msra.mxu0 %v1629_v15 }
  0x24   : > { %1631 = vmatprep.subr.bf16.mxu0 %v1787_v3 }
  0x25   : > { %1642 = vmatpush3.bf16.msra.mxu1 %v1641_v27 }
  0x26   : > { %1643 = vmatprep.subr.bf16.mxu1 %v1787_v3 }
  0x27   : > { %1633 = vmatpush3.bf16.msra.mxu0 %v1632_v18  ;;  %v1473_v18 = vld [vmem:[%s2163_s12] ss:$0 sm:$0xff] }
  0x28   : > { %1634 = vmatprep.subr.bf16.mxu0 %v1787_v3 }
  0x29   : > { %1645 = vmatpush3.bf16.msra.mxu1 %v1644_v30 }
  0x2a   : > { %1646 = vmatprep.subr.bf16.mxu1 %v1787_v3 }
  0x2b   : > { %1636 = vmatpush3.bf16.msra.mxu0 %v1635_v21  ;;  %v1796_v21 = vmov 2  }
  0x2c   : > { %1650 = vmatprep.subr.bf16.mxu0 %v1649_v36 }
  0x2d   : > { %1648 = vmatpush3.bf16.msra.mxu1 %v1647_v33 }
  0x2e   : > { %1657 = vmatprep.subr.bf16.mxu1 %v1787_v3 }
  0xf1   : > { %v529_v37 = vpop.f32.mrb[0].mxu0 }
  0xf2   : > { %v602_v38 = vpop.f32.mrb[0].mxu1  ;;  %v1537_v41 = vpop.f32.mrb[1].mxu0 }
  0xf3   : > { %v603_v40 = vadd.f32 %v602_v38, %v529_v37  ;;  %v1544_v42 = vpop.f32.mrb[1].mxu1 }
  0xf5   : > { %v613_v47 = vadd.f32 %v1467_v39, %v603_v40 }
  0xf7   : > { %v614_v49 = vmax.f32 %v613_v47, 0.0 }
  0xf9   : > { %719 = vrot.lane.b32.xlu0 %v614_v49, %s1790_s2  ;;  %1562 = vmatmul.mubr.msk.f32.vlgmr.msra.gmra.mrb[2].mxu0 %vm630_vm2, %v614_v49 }
  0xfa   : > { %1652 = vmatpush1.bf16.msra.mxu0 %v1651_v48  ;;  %881 = vmatprep.mubr.f32.mxu0 %v1789_v7 }
  0xfb   : > { %1654 = vmatprep.subr.bf16.mxu0 %v1653_v50 }
  0xfe   : > { %1656 = vmatpush1.bf16.msra.mxu0 %v1655_v53 }
  0xff   : > { %1594 = vmatprep.subr.mxu0 %v1789_v7 }
 0x16b   : > { %v720_v59 = vpop.permute.xlu0 %719 }
 0x16c   : > { %1581 = vmatmul.mubr.msk.f32.vlgmr.msra.gmra.mrb[2].mxu1 %vm630_vm2, %v720_v59 }
 0x16d   : > { %1659 = vmatpush3.bf16.msra.mxu1 %v1658_v56  ;;  %1591 = vmatprep.mubr.msk.f32.mxu1 %vm1788_vm0, %v1789_v7 }
 0x16e   : > { %1660 = vmatprep.subr.bf16.mxu1 %v1787_v3  ;;  %v1470_v3 = vld [vmem:[%s2159_s8] ss:$0 sm:$0xff] }
 0x171   : > { %1662 = vmatpush3.bf16.msra.mxu1 %v1661_v60 }
 0x172   : > { %1599 = vmatprep.subr.mxu1 %v1789_v7 }
 0x1cc   : > { %v700_v62 = vpop.f32.mrb[2].mxu0 }
 0x1cd   : > { %v701_v63 = vadd.f32 %v1468_v61, %v700_v62  ;;  %v1563_v0 = vpop.f32.mrb[3].mxu0 }
 0x1cf   : > { %1472 = vmatmul.mubr.msk.f32.vlgmr.msra.gmra.mrb[4].mxu0 %vm813_vm3, %v701_v63  ;;  %1592 = vmatmul.mubr.msk.f32.vlgmr.msra.gmra.mrb[4].mxu1 %vm813_vm3, %v701_v63 }
 0x1d0   : > { %1596 = vmatprep.mubr.msk.f32.mxu0 %vm1788_vm0, %v1789_v7  ;;  %1601 = vmatprep.mubr.msk.f32.mxu1 %vm1788_vm0, %v1789_v7 }
 0x23f   : > { %v789_v4 = vpop.f32.mrb[2].mxu1 }
 0x240   : > { %v790_v5 = vadd.f32 %v1470_v3, %v789_v4  ;;  %v1582_v6 = vpop.f32.mrb[3].mxu1 }
 0x242   : > { %1595 = vmatpush3.xpose.msk.msra.mxu0 %vm813_vm3, %v790_v5  ;;  %1600 = vmatpush3.xpose.msk.msra.mxu1 %vm813_vm3, %v790_v5 }
 0x243   : > { %1604 = vmatprep.subr.mxu0 %v1789_v7  ;;  %1609 = vmatprep.subr.mxu1 %v1789_v7 }
 0x2a2   : > { %v883_v13 = vpop.f32.mrb[4].mxu0  ;;  %v965_v14 = vpop.f32.mrb[4].mxu1 }
 0x2a3   : > { %v884_v15 = vadd.f32 %v883_v13, %v806_v12  ;;  %v885_v16 = vpop.f32.mrb[5].mxu0  ;;  %v1593_v17 = vpop.f32.mrb[5].mxu1  ;;  %v966_v19 = vadd.f32 %v1473_v18, %v965_v14 }
 0x2a4   : > { %v886_v27 = vadd.f32 %v885_v16, %v810_v24 }
 0x2a5   : > { %1136 = vrot.lane.b32.xlu1 %v884_v15, %s1790_s2  ;;  %1056 = vrot.lane.b32.xlu0 %v884_v15, %s1793_s24  ;;  %s442_s2 = sand.u32 1, %s1777_s26   ;;  %s1727_s24 = sshll.u32 %s1798_s23, 4  ;;  %s1728_s24 = int_to_ptr.vmem [resolvable:$false] %s1727_s24 }
 0x2a6   : > { %1597 = vmatmul.mubr.msk.f32.vlgmr.msra.gmra.mrb[6].mxu0 %vm813_vm3, %v884_v15  ;;  %s1663_s3 = smul.u32 40, %s442_s2  ;;  %s2110_s21 = scalar_lea.sflag [#allocation3], %s442_s2 }
 0x2a7   : > { %1605 = vmatpush3.xpose.msk.msra.mxu0 %vm813_vm3, %v790_v5  ;;  %1606 = vmatprep.mubr.msk.f32.mxu0 %vm1788_vm0, %v1789_v7 }
 0x2a8   : > { %1614 = vmatprep.subr.mxu0 %v1789_v7  ;;  %s444_s17 = scalar_lea.vmem [#allocation2], %s1663_s3 }
 0x2a9   : > { %1216 = vrot.lane.b32.xlu1 %v884_v15, %s1794_s27  ;;  %971 = vperm.xlu0 %1717, %v966_v19   ;;  %s1385_s30 = sshll.u32 %s444_s17, 4  ;;  %s1729_s27 = scalar_lea.vmem %s1728_s24, 1280  ;;  %s2099_s30 = int_to_ptr.vmem [resolvable:$true] %s1385_s30 }
 0x2aa   : > { %s1723_s22 = scalar_lea.vmem %s2099_s30, 640  ;;  %p1730_p0 = scmp.lt.s32.totalorder %s2099_s30, %s1728_s24 }
 0x2ab   : > { %p1724_p11 = scmp.ne.s32.totalorder %s2099_s30, %s1723_s22  ;;  %p1731_p1 = scmp.lt.s32.totalorder %s1729_s27, %s1723_s22 }
 0x2ad   : > { %1053 = vperm.xlu1 %1718, %v966_v19   ;;  %1720 = vset.pattern.permute.xlu0 %v1795_v20  ;;  %p1725_p12 = pnand %p1724_p11, %p1909_p5  ;;  %p1732_p2 = por %p1731_p1, %p1730_p0 }
 0x2ae   : > { %1213 = vperm.xlu0 %1720, %v966_v19  }
 0x2af   : > { %p1726_p13 = pneg %p1725_p12 }
 0x2b1   : > { %1719 = vset.pattern.permute.xlu1 %v1796_v21  ;;  %p1733_p3 = pnand %p1732_p2, %p1726_p13 }
 0x2b2   : > { %1133 = vperm.xlu1 %1719, %v966_v19   ;;  %1722 = vset.pattern.permute.xlu0 %v1797_v22 }
 0x2b6   : > { %1721 = vset.pattern.permute.xlu1 %v1797_v22 }
 0x2b7   : > { %1293 = vperm.xlu1 %1721, %v966_v19  }
 0x317   : > { %v1137_v25 = vpop.permute.xlu1 %1136  ;;  %v1057_v26 = vpop.permute.xlu0 %1056 }
 0x318   : > { %1602 = vmatmul.mubr.msk.f32.vlgmr.msra.gmra.mrb[6].mxu1 %vm813_vm3, %v1057_v26  ;;  %1607 = vmatmul.mubr.msk.f32.vlgmr.msra.gmra.mrb[8].mxu0 %vm813_vm3, %v1137_v25 }
 0x319   : > { %1610 = vmatpush3.xpose.msk.msra.mxu1 %vm813_vm3, %v790_v5  ;;  %1615 = vmatpush3.xpose.msk.msra.mxu0 %vm813_vm3, %v790_v5 }
 0x31a   : > { %1611 = vmatprep.mubr.msk.f32.mxu1 %vm1788_vm0, %v1789_v7  ;;  %1616 = vmatprep.mubr.msk.f32.mxu0 %vm1788_vm0, %v1789_v7 }
 0x31b   : > { %v1217_v28 = vpop.permute.xlu1 %1216 }
 0x31c   : > { %1612 = vmatmul.mubr.msk.f32.vlgmr.msra.gmra.mrb[8].mxu1 %vm813_vm3, %v1217_v28  ;;  %1617 = vmatmul.mubr.msk.f32.vlgmr.msra.gmra.mrb[10].mxu0 %vm813_vm3, %v886_v27 }
 0x328   : > { %v972_v29 = vpop.permute.xlu0 %971 }
 0x32c   : > { %v1054_v33 = vpop.permute.xlu1 %1053 }
 0x32d   : > { %v1214_v40 = vpop.permute.xlu0 %1213 }
 0x331   : > { %v1134_v34 = vpop.permute.xlu1 %1133 }
 0x336   : > { %v1294_v41 = vpop.permute.xlu1 %1293 }
 0x379   : > { %v1046_v30 = vpop.f32.mrb[6].mxu0 }
 0x37a   : > { %v1047_v31 = vadd.f32 %v1046_v30, %v972_v29  ;;  %v1598_v32 = vpop.f32.mrb[7].mxu0 }
 0x37c   : > { %1051 = vst.msk [vmem:[%s444_s17] sm:$0xff] %vm1050_vm4, %v1047_v31 }
 0x3eb   : > { %v1126_v7 = vpop.f32.mrb[6].mxu1  ;;  %v1206_v35 = vpop.f32.mrb[8].mxu0 }
 0x3ec   : > { %v1127_v36 = vadd.f32 %v1126_v7, %v1054_v33  ;;  %v1207_v37 = vadd.f32 %v1206_v35, %v1134_v34  ;;  %v1603_v38 = vpop.f32.mrb[7].mxu1  ;;  %v1608_v39 = vpop.f32.mrb[9].mxu0 }
 0x3ee   : > { %1479 = vst.msk [vmem:[%s444_s17 + $0x8] sm:$0xff] %vm1050_vm4, %v1127_v36  ;;  %1482 = vst.msk [vmem:[%s444_s17 + $0x10] sm:$0xff] %vm1050_vm4, %v1207_v37 }
 0x3ef   : > { %v1286_v42 = vpop.f32.mrb[8].mxu1  ;;  %v1365_v43 = vpop.f32.mrb[10].mxu0 }
 0x3f0   : > { %v1287_v44 = vadd.f32 %v1286_v42, %v1214_v40  ;;  %v1366_v45 = vadd.f32 %v1365_v43, %v1294_v41  ;;  %v1613_v46 = vpop.f32.mrb[9].mxu1  ;;  %v1618_v47 = vpop.f32.mrb[11].mxu0 }
 0x3f2   : > { %1485 = vst.msk [vmem:[%s444_s17 + $0x18] sm:$0xff] %vm1050_vm4, %v1287_v44  ;;  %1488 = vst.msk [vmem:[%s444_s17 + $0x20] sm:$0xff] %vm1050_vm4, %v1366_v45 }
 0x3f3   : > { %1736 = shalt.err (!%p1733_p3)
}
 0x3f4   : > { %s1737_s2 = scalar_lea.hbm %s2104_s20, 640  ;;  %s1741_s15 = scalar_lea.hbm %s2164_s13, 1280 }
 0x3f5   : > { %p1738_p4 = scmp.ne.s32.totalorder %s2104_s20, %s1737_s2  ;;  %p1742_p9 = scmp.lt.u32.totalorder %s2104_s20, %s2164_s13 }
 0x3f6   : > { %p1743_p10 = scmp.lt.u32.totalorder %s1741_s15, %s1737_s2  ;;  %p1745_p12 = scmp.lt.u32.totalorder %s1737_s2, %s2104_s20 }
 0x3f7   : > { %p1739_p7 = pnand %p1738_p4, %p1909_p5 }
 0x3f8   : > { %p1744_p11 = por %p1743_p10, %p1742_p9 }
 0x3f9   : > { %p1740_p8 = pneg %p1739_p7 }
 0x3fa   : > { %p1746_p13 = por %p1745_p12, %p1744_p11 }
 0x3fc   : > { %p1747_p0 = pnand %p1746_p13, %p1740_p8 }
 0x3fe   : > { %1750 = shalt.err (!%p1747_p0)
}
 0x3ff   : > { %s1799_s22 = smov 128   ;;  %s1800_s23 = smov 8  }
 0x400   : > { %1665 = dma.vmem_to_hbm [thread:$0]  (%p1909_p5), %s2099_s30, 640, %s2104_s20, %s2110_s21, %s1799_s22, %s1799_s22, %s1800_s23  }
 0x401 PF: > { %p1671_p1 = scmp.ge.s32.totalorder %s1785_s28, 2  ;;  %s1400_s24 = sand.u32 1, %s1773_s25  }
 0x402   : > { %s1401_s27 = scalar_lea.sflag [#allocation3], %s1400_s24 }
 0x403   : > { %p1668_p2 = pnand %p1671_p1, %p1913_p6 }
 0x405   : > { %1768 = dma.done.wait (!%p1668_p2), %s1401_s27, 640  }
 0x406   : > { %1770 = vsyncadd (!%p1668_p2), %s1401_s27, 4294966656  ;;  %s2174_s2 = sld [smem:[#allocation5_spill]]  ;;  %s2175_s27 = sld [smem:[#allocation6_spill]] }
 0x407   : > { %p23_p3 = scmp.ge.s32.totalorder %s1896_s14, 4   ;;  %s2176_s25 = smov %s1777_s26 }
 0x408   : > { %s2178_s28 = smov %s1896_s14 }
 0x409   :  { %25 = sbr.rel (!%p23_p3) target bundleno = 6 (0x6), region = 114 }
 0x40c   : > { %s2177_s26 = smov %s2174_s2 }
 0x410   :  { %1406 = vsyncpa [#allocation3], 1 }
 0x411   :  { %1408 = vsyncpa [#allocation3 + $0x1], 1 }

</bundles_post_ra>
